<compile_context>
chip_gen: v5e
topology: v5e:2x2
jax: 0.10.0
libtpu: 0.0.40
codegen_flags: <defaults>
</compile_context>

<pallas_src>
import functools

import numpy as np
import jax
import jax.numpy as jnp
from jax import lax
from jax.experimental import pallas as pl
from jax.experimental.pallas import tpu as pltpu

PRELU_ALPHA = 0.25   # PyTorch nn.PReLU() default init
BN_EPS = 1e-5        # PyTorch BatchNorm2d default eps


# ----------------------------- helpers -------------------------------------

def _round_up(x, m):
    return ((x + m - 1) // m) * m


def _pick_divisor(n, candidates):
    for c in candidates:
        if n % c == 0:
            return c
    return 128


def _pick_tk(kp):
    """Largest K tile (multiple of 128, <= 2048)."""
    if kp <= 2048:
        return kp
    nk = -(-kp // 2048)
    return _round_up(-(-kp // nk), 128)


def _softplus(r):
    # numerically-stable softplus (matches F.softplus)
    return jnp.log(1.0 + jnp.exp(-jnp.abs(r))) + jnp.maximum(r, 0.0)


# ----------------------------- Pallas kernels ------------------------------

def _matmul_kernel(a_ref, b_ref, bias_ref, mask_ref, o_ref, *, act, alpha):
    """act(A @ B + bias); accumulates directly into the f32 output block.

    mask_ref is a (1, tn) f32 tile: 1.0 for columns that get softplus(+1e-8)
    in 'mu_var' mode, 0.0 otherwise.  It is ignored for other activations.
    """
    k = pl.program_id(2)

    @pl.when(k == 0)
    def _():
        o_ref[...] = jnp.zeros_like(o_ref)

    o_ref[...] += jnp.dot(a_ref[...], b_ref[...],
                          preferred_element_type=jnp.float32)

    @pl.when(k == pl.num_programs(2) - 1)
    def _():
        r = o_ref[...] + bias_ref[...]
        if act == "prelu":
            r = jnp.where(r >= 0, r, alpha * r)
        elif act == "tanh":
            r = jnp.tanh(r)
        elif act == "softplus":
            r = _softplus(r) + 1e-8
        elif act == "mu_var":
            # var columns (mask==1) -> softplus + 1e-8 ; mu columns -> identity.
            r = jnp.where(mask_ref[...] > 0, _softplus(r) + 1e-8, r)
        o_ref[...] = r


def _bn_prelu_kernel(x_ref, o_ref, *, alpha, eps):
    """Training-mode BatchNorm (affine=False) + PReLU on one 128-channel slab."""
    x = x_ref[...]
    mean = jnp.mean(x, axis=0, keepdims=True)
    d = x - mean
    var = jnp.mean(d * d, axis=0, keepdims=True)   # biased, two-pass
    y = d * lax.rsqrt(var + eps)
    o_ref[...] = jnp.where(y >= 0, y, alpha * y)


# ----------------------------- kernel wrappers ------------------------------

def fused_linear(a, layer, act="none", alpha=PRELU_ALPHA):
    """act(a @ W + b) with pre-packed (padded, bf16) weights from prepare_params."""
    M, K = a.shape
    w_p, b_p, m_p, tk = layer["w"], layer["b"], layer["mask"], layer["tk"]
    Kp, Np = w_p.shape
    assert K == layer["k"], (K, layer["k"])

    tm = 256 if M >= 256 else _round_up(M, 16)
    Mp = _round_up(M, tm)
    if M < 256:
        tn = _pick_divisor(Np, (512, 256, 128))
    else:
        tn = _pick_divisor(Np, (256, 128))

    a_p = jnp.pad(a.astype(jnp.bfloat16), ((0, Mp - M), (0, Kp - K)))
    grid = (Mp // tm, Np // tn, Kp // tk)

    # double-buffered A + B + bias/mask + resident f32 output, generous headroom
    footprint = 2 * (tm * tk * 2 + tk * tn * 2 + 2 * tn * 4 + tm * tn * 4)
    vmem_limit = int(min(max(4 * footprint, 16 * 1024 * 1024), 32 * 1024 * 1024))

    out = pl.pallas_call(
        functools.partial(_matmul_kernel, act=act, alpha=alpha),
        out_shape=jax.ShapeDtypeStruct((Mp, Np), jnp.float32),
        grid_spec=pltpu.PrefetchScalarGridSpec(
            num_scalar_prefetch=0,
            grid=grid,
            in_specs=[
                pl.BlockSpec((tm, tk), lambda i, j, k: (i, k)),
                pl.BlockSpec((tk, tn), lambda i, j, k: (k, j)),
                pl.BlockSpec((1, tn), lambda i, j, k: (0, j)),
                pl.BlockSpec((1, tn), lambda i, j, k: (0, j)),
            ],
            out_specs=pl.BlockSpec((tm, tn), lambda i, j, k: (i, j)),
        ),
        compiler_params=pltpu.CompilerParams(
            dimension_semantics=("parallel", "parallel", "arbitrary"),
            vmem_limit_bytes=vmem_limit,
        ),
    )(a_p, w_p, b_p, m_p)
    return out[:M, :layer["n"]]


def bn_prelu(x2d, alpha=PRELU_ALPHA):
    """BatchNorm2d(affine=False, training) + PReLU on a (rows, channels) view,
    tiled over the channel axis (stats are per-channel over all rows)."""
    # TODO(synk): for very large rows (B*H*W), add row tiling + two-pass stats.
    R, C = x2d.shape
    Cp = _round_up(C, 128)
    xp = jnp.pad(x2d.astype(jnp.float32), ((0, 0), (0, Cp - C)))
    ct = 128
    out = pl.pallas_call(
        functools.partial(_bn_prelu_kernel, alpha=alpha, eps=BN_EPS),
        out_shape=jax.ShapeDtypeStruct((R, Cp), jnp.float32),
        grid=(Cp // ct,),
        in_specs=[pl.BlockSpec((R, ct), lambda j: (0, j))],
        out_specs=pl.BlockSpec((R, ct), lambda j: (0, j)),
        compiler_params=pltpu.CompilerParams(
            dimension_semantics=("parallel",)),
    )(xp)
    return out[:, :C]


# ----------------------------- params --------------------------------------

def _uniform(key, shape, bound):
    return jax.random.uniform(key, shape, jnp.float32, -bound, bound)


def init_params(key, cfg):
    """PyTorch-equivalent parameters (math layout: Linear weights stored as (in, out))."""
    Cin, Cout = cfg["in_channels"], cfg["out_channels"]
    L_in, L_out = cfg["in_latent"], cfg["out_latent"]
    H, W = cfg["img_size"]
    ks = iter(jax.random.split(key, 8))
    fc_out = Cin * H * W
    b_fc = 1.0 / np.sqrt(L_in)
    b_ct = 1.0 / np.sqrt(Cin * 4)
    mv_in = Cout * 2 * H * 2 * W
    b_mv = 1.0 / np.sqrt(mv_in)
    return dict(
        fc_w=_uniform(next(ks), (L_in, fc_out), b_fc),
        fc_b=_uniform(next(ks), (fc_out,), b_fc),
        ct_w=_uniform(next(ks), (Cin, Cout, 2, 2), b_ct),      # ConvTranspose2d layout
        ct_b=_uniform(next(ks), (Cout,), b_ct),
        fcm_w=_uniform(next(ks), (mv_in, L_out), b_mv),
        fcm_b=_uniform(next(ks), (L_out,), b_mv),
        fcv_w=_uniform(next(ks), (mv_in, L_out), b_mv),
        fcv_b=_uniform(next(ks), (L_out,), b_mv),
    )


def _pack_linear(w, b, var_start=None):
    """Pre-pad (128 multiples) + bf16-cast a linear layer once, outside the forward.

    var_start: first output column that should receive softplus(+1e-8) in the
    fused mu||var epilogue; encoded as a (1, Np) f32 mask (0 elsewhere).
    """
    K, N = w.shape
    kp0 = _round_up(K, 128)
    tk = _pick_tk(kp0)
    Kp = _round_up(kp0, tk)
    Np = _round_up(N, 128)
    w_p = jnp.pad(w.astype(jnp.float32), ((0, Kp - K), (0, Np - N))).astype(jnp.bfloat16)
    b_p = jnp.pad(b.astype(jnp.float32), (0, Np - N)).reshape(1, Np)
    mask = np.zeros((1, Np), np.float32)
    if var_start is not None:
        mask[0, var_start:N] = 1.0
    return dict(w=w_p, b=b_p, mask=jnp.asarray(mask), tk=tk, k=K, n=N)


def prepare_params(params, cfg):
    """One-time packing: reorder weight columns so no NCHW<->NHWC copies are needed
    in the forward, fold the 2x2 ConvTranspose into a matmul weight, fuse fcm||fcv."""
    Cin, Cout = cfg["in_channels"], cfg["out_channels"]
    L_out = cfg["out_latent"]
    H, W = cfg["img_size"]

    # fc: permute output columns from NCHW-flat (ci,h,w) to (h,w,ci) so the fc output
    # reshapes directly into the (B*H*W, Cin) operand of the ConvTranspose matmul.
    perm = np.arange(Cin * H * W).reshape(Cin, H, W).transpose(1, 2, 0).reshape(-1)
    fc_w = params["fc_w"][:, perm]
    fc_b = params["fc_b"][perm]

    # ConvTranspose2d(2,2,s=2,p=0): (Cin,Cout,2,2) -> (Cin, 4*Cout), columns (kh,kw,co)
    ct_w = params["ct_w"].transpose(0, 2, 3, 1).reshape(Cin, 4 * Cout)
    ct_b = jnp.tile(params["ct_b"], 4)

    # fused fc_mean || fc_var (same A operand, one pallas_call)
    mv_w = jnp.concatenate([params["fcm_w"], params["fcv_w"]], axis=1)
    mv_b = jnp.concatenate([params["fcm_b"], params["fcv_b"]], axis=0)

    return dict(cfg=cfg,
                fc=_pack_linear(fc_w, fc_b),
                ct=_pack_linear(ct_w, ct_b),
                fc_mv=_pack_linear(mv_w, mv_b, var_start=L_out))


# ----------------------------- forward --------------------------------------

def decoder_block_forward(prep, z):
    cfg = prep["cfg"]
    Cin, Cout = cfg["in_channels"], cfg["out_channels"]
    L_out = cfg["out_latent"]
    H, W = cfg["img_size"]
    B = z.shape[0]

    # fc + PReLU (output columns pre-ordered as (h, w, ci))
    x = fused_linear(z, prep["fc"], act="prelu")                 # (B, H*W*Cin)
    x = x.reshape(B * H * W, Cin)

    # ConvTranspose2d(2x2, stride 2) as a matmul; columns ordered (kh, kw, co)
    y = fused_linear(x, prep["ct"], act="none")                  # (B*H*W, 4*Cout)

    # BatchNorm2d(affine=False, training) + PReLU; per-channel stats over all
    # spatial positions == stats over rows of this (B*H*W*4, Cout) view.
    y = bn_prelu(y.reshape(B * H * W * 4, Cout))

    # depth-to-space to NCHW (the module returns NCHW and flattens it NCHW-wise)
    h = (y.reshape(B, H, W, 2, 2, Cout)
           .transpose(0, 5, 1, 3, 2, 4)
           .reshape(B, Cout, 2 * H, 2 * W))

    # fused fc_mean || fc_var on the NCHW-flattened features
    h_flat = h.reshape(B, Cout * 4 * H * W)
    mv = fused_linear(h_flat, prep["fc_mv"], act="mu_var")
    mu, var = mv[:, :L_out], mv[:, L_out:2 * L_out]
    return h, mu, var


# ----------------------------- f32 reference --------------------------------

def reference_forward(params, z, cfg):
    B = z.shape[0]
    Cin, Cout = cfg["in_channels"], cfg["out_channels"]
    H, W = cfg["img_size"]
    x = z @ params["fc_w"] + params["fc_b"]
    x = jnp.where(x >= 0, x, PRELU_ALPHA * x)
    x = x.reshape(B, Cin, H, W)
    y = jnp.einsum("bchw,cokl->bohkwl", x, params["ct_w"])
    y = y.reshape(B, Cout, 2 * H, 2 * W) + params["ct_b"][None, :, None, None]
    mean = y.mean(axis=(0, 2, 3), keepdims=True)
    var = ((y - mean) ** 2).mean(axis=(0, 2, 3), keepdims=True)
    y = (y - mean) * lax.rsqrt(var + BN_EPS)
    h = jnp.where(y >= 0, y, PRELU_ALPHA * y)
    h_flat = h.reshape(B, -1)
    mu = h_flat @ params["fcm_w"] + params["fcm_b"]
    v = h_flat @ params["fcv_w"] + params["fcv_b"]
    v = jnp.log(1.0 + jnp.exp(-jnp.abs(v))) + jnp.maximum(v, 0.0) + 1e-8
    return h, mu, v


def _check(name, got, ref, tol=0.05):
    got = np.asarray(got, np.float32)
    ref = np.asarray(ref, np.float32)
    err = float(np.max(np.abs(got - ref)))
    scale = float(np.max(np.abs(ref))) + 1e-6
    assert err <= tol * scale, f"{name}: max abs err {err} vs scale {scale}"


# ----------------------------------- main -----------------------------------

if __name__ == "__main__":
    cfg = dict(in_latent=256, out_latent=64, in_channels=32, out_channels=16,
               img_size=(4, 4))        # ks=2, stride=2, padding=0 (as used in LVAE)
    B = 2

    key = jax.random.PRNGKey(0)
    kp, kz = jax.random.split(key)
    params = init_params(kp, cfg)
    prep = prepare_params(params, cfg)          # one-time pack/pad (not per forward)
    z = jax.random.normal(kz, (B, cfg["in_latent"]), jnp.float32)

    fwd = jax.jit(lambda zz: decoder_block_forward(prep, zz))
    h, mu, var = fwd(z)
    jax.block_until_ready((h, mu, var))

    H, W = cfg["img_size"]
    assert h.shape == (B, cfg["out_channels"], 2 * H, 2 * W)
    assert mu.shape == (B, cfg["out_latent"])
    assert var.shape == (B, cfg["out_latent"])
    assert bool(jnp.all(var > 0))

    # correctness vs plain-f32 reference (loose tol: bf16 MXU operands)
    h_r, mu_r, var_r = reference_forward(params, z, cfg)
    _check("h", h, h_r)
    _check("mu", mu, mu_r)
    _check("var", var, var_r)

    print("KERNEL_OK")
</pallas_src>

<mosaic_0001>
module attributes {stable_mosaic.version = 11 : i64} {
  func.func @_matmul_kernel(%arg0: i32, %arg1: i32, %arg2: i32, %arg3: memref<16x256xbf16, #tpu.memory_space<vmem>>, %arg4: memref<256x512xbf16, #tpu.memory_space<vmem>>, %arg5: memref<1x512xf32, #tpu.memory_space<vmem>>, %arg6: memref<1x512xf32, #tpu.memory_space<vmem>>, %arg7: memref<16x512xf32, #tpu.memory_space<vmem>>) attributes {dimension_semantics = [#tpu.dimension_semantics<parallel>, #tpu.dimension_semantics<parallel>, #tpu.dimension_semantics<arbitrary>], iteration_bounds = array<i64: 1, 1, 1>, scalar_prefetch = 0 : i64, scratch_operands = 0 : i64, tpu.core_type = #tpu.core_type<tc>, window_params = [{transform_indices = @transform_0, window_bounds = array<i64: 16, 256>}, {transform_indices = @transform_1, window_bounds = array<i64: 256, 512>}, {transform_indices = @transform_2, window_bounds = array<i64: 1, 512>}, {transform_indices = @transform_3, window_bounds = array<i64: 1, 512>}, {transform_indices = @transform_4, window_bounds = array<i64: 16, 512>}]} {
    %c0_i32 = arith.constant 0 : i32
    %0 = arith.cmpi eq, %arg2, %c0_i32 : i32
    %1 = arith.extui %0 : i1 to i32
    %c0_i32_0 = arith.constant 0 : i32
    %2 = arith.cmpi ne, %1, %c0_i32_0 : i32
    scf.if %2 {
      %cst_10 = arith.constant 0.000000e+00 : f32
      %12 = vector.broadcast %cst_10 : f32 to vector<16x512xf32>
      %c0_11 = arith.constant 0 : index
      %c0_12 = arith.constant 0 : index
      %13 = vector.load %arg7[%c0_11, %c0_12] : memref<16x512xf32, #tpu.memory_space<vmem>>, vector<16x512xf32>
      tpu.vector_store %arg7[%c0_11, %c0_12], %12 {strides = array<i32>} : memref<16x512xf32, #tpu.memory_space<vmem>>, vector<16x512xf32>,
    } else {
    }
    %c0 = arith.constant 0 : index
    %c0_1 = arith.constant 0 : index
    %3 = vector.load %arg7[%c0, %c0_1] : memref<16x512xf32, #tpu.memory_space<vmem>>, vector<16x512xf32>
    %c0_2 = arith.constant 0 : index
    %c0_3 = arith.constant 0 : index
    %4 = vector.load %arg3[%c0_2, %c0_3] : memref<16x256xbf16, #tpu.memory_space<vmem>>, vector<16x256xbf16>
    %c0_4 = arith.constant 0 : index
    %c0_5 = arith.constant 0 : index
    %5 = vector.load %arg4[%c0_4, %c0_5] : memref<256x512xbf16, #tpu.memory_space<vmem>>, vector<256x512xbf16>
    %cst = arith.constant dense<0.000000e+00> : vector<16x512xf32>
    %6 = tpu.matmul %4, %5, %cst {dimension_numbers = #tpu.dot_dimension_numbers<[1], [0], [0], [1], [0, 0, 1, 1], [], []>} : vector<16x256xbf16>, vector<256x512xbf16>, vector<16x512xf32> -> vector<16x512xf32>
    %7 = arith.addf %3, %6 : vector<16x512xf32>
    %c0_6 = arith.constant 0 : index
    %c0_7 = arith.constant 0 : index
    %8 = vector.load %arg7[%c0_6, %c0_7] : memref<16x512xf32, #tpu.memory_space<vmem>>, vector<16x512xf32>
    tpu.vector_store %arg7[%c0_6, %c0_7], %7 {strides = array<i32>} : memref<16x512xf32, #tpu.memory_space<vmem>>, vector<16x512xf32>,
    %c0_i32_8 = arith.constant 0 : i32
    %9 = arith.cmpi eq, %arg2, %c0_i32_8 : i32
    %10 = arith.extui %9 : i1 to i32
    %c0_i32_9 = arith.constant 0 : i32
    %11 = arith.cmpi ne, %10, %c0_i32_9 : i32
    scf.if %11 {
      %c0_10 = arith.constant 0 : index
      %c0_11 = arith.constant 0 : index
      %12 = vector.load %arg7[%c0_10, %c0_11] : memref<16x512xf32, #tpu.memory_space<vmem>>, vector<16x512xf32>
      %c0_12 = arith.constant 0 : index
      %c0_13 = arith.constant 0 : index
      %13 = vector.load %arg5[%c0_12, %c0_13] : memref<1x512xf32, #tpu.memory_space<vmem>>, vector<1x512xf32>
      %14 = vector.broadcast %13 : vector<1x512xf32> to vector<16x512xf32>
      %15 = arith.addf %12, %14 : vector<16x512xf32>
      %cst_14 = arith.constant 0.000000e+00 : f32
      %16 = vector.broadcast %cst_14 : f32 to vector<16x512xf32>
      %17 = arith.cmpf oge, %15, %16 : vector<16x512xf32>
      %cst_15 = arith.constant 2.500000e-01 : f32
      %18 = vector.broadcast %cst_15 : f32 to vector<16x512xf32>
      %19 = arith.mulf %18, %15 : vector<16x512xf32>
      %20 = arith.select %17, %15, %19 : vector<16x512xi1>, vector<16x512xf32>
      %c0_16 = arith.constant 0 : index
      %c0_17 = arith.constant 0 : index
      %21 = vector.load %arg7[%c0_16, %c0_17] : memref<16x512xf32, #tpu.memory_space<vmem>>, vector<16x512xf32>
      tpu.vector_store %arg7[%c0_16, %c0_17], %20 {strides = array<i32>} : memref<16x512xf32, #tpu.memory_space<vmem>>, vector<16x512xf32>,
    } else {
    }
    return
  }
  func.func @transform_0(%arg0: i32, %arg1: i32, %arg2: i32) -> (i32, i32) {
    %c0_i32 = arith.constant 0 : i32
    return %arg0, %arg2 : i32, i32
  }
  func.func @transform_1(%arg0: i32, %arg1: i32, %arg2: i32) -> (i32, i32) {
    %c0_i32 = arith.constant 0 : i32
    return %arg2, %arg1 : i32, i32
  }
  func.func @transform_2(%arg0: i32, %arg1: i32, %arg2: i32) -> (i32, i32) {
    %c0_i32 = arith.constant 0 : i32
    %c0_i32_0 = arith.constant 0 : i32
    return %c0_i32, %arg1 : i32, i32
  }
  func.func @transform_3(%arg0: i32, %arg1: i32, %arg2: i32) -> (i32, i32) {
    %c0_i32 = arith.constant 0 : i32
    %c0_i32_0 = arith.constant 0 : i32
    return %c0_i32, %arg1 : i32, i32
  }
  func.func @transform_4(%arg0: i32, %arg1: i32, %arg2: i32) -> (i32, i32) {
    %c0_i32 = arith.constant 0 : i32
    return %arg0, %arg1 : i32, i32
  }
}

module attributes {stable_mosaic.version = 11 : i64} {
  func.func @_matmul_kernel(%arg0: i32, %arg1: i32, %arg2: i32, %arg3: memref<32x128xbf16, #tpu.memory_space<vmem>>, %arg4: memref<128x128xbf16, #tpu.memory_space<vmem>>, %arg5: memref<1x128xf32, #tpu.memory_space<vmem>>, %arg6: memref<1x128xf32, #tpu.memory_space<vmem>>, %arg7: memref<32x128xf32, #tpu.memory_space<vmem>>) attributes {dimension_semantics = [#tpu.dimension_semantics<parallel>, #tpu.dimension_semantics<parallel>, #tpu.dimension_semantics<arbitrary>], iteration_bounds = array<i64: 1, 1, 1>, scalar_prefetch = 0 : i64, scratch_operands = 0 : i64, tpu.core_type = #tpu.core_type<tc>, window_params = [{transform_indices = @transform_0, window_bounds = array<i64: 32, 128>}, {transform_indices = @transform_1, window_bounds = array<i64: 128, 128>}, {transform_indices = @transform_2, window_bounds = array<i64: 1, 128>}, {transform_indices = @transform_3, window_bounds = array<i64: 1, 128>}, {transform_indices = @transform_4, window_bounds = array<i64: 32, 128>}]} {
    %c0_i32 = arith.constant 0 : i32
    %0 = arith.cmpi eq, %arg2, %c0_i32 : i32
    %1 = arith.extui %0 : i1 to i32
    %c0_i32_0 = arith.constant 0 : i32
    %2 = arith.cmpi ne, %1, %c0_i32_0 : i32
    scf.if %2 {
      %cst_10 = arith.constant 0.000000e+00 : f32
      %12 = vector.broadcast %cst_10 : f32 to vector<32x128xf32>
      %c0_11 = arith.constant 0 : index
      %c0_12 = arith.constant 0 : index
      %13 = vector.load %arg7[%c0_11, %c0_12] : memref<32x128xf32, #tpu.memory_space<vmem>>, vector<32x128xf32>
      tpu.vector_store %arg7[%c0_11, %c0_12], %12 {strides = array<i32>} : memref<32x128xf32, #tpu.memory_space<vmem>>, vector<32x128xf32>,
    } else {
    }
    %c0 = arith.constant 0 : index
    %c0_1 = arith.constant 0 : index
    %3 = vector.load %arg7[%c0, %c0_1] : memref<32x128xf32, #tpu.memory_space<vmem>>, vector<32x128xf32>
    %c0_2 = arith.constant 0 : index
    %c0_3 = arith.constant 0 : index
    %4 = vector.load %arg3[%c0_2, %c0_3] : memref<32x128xbf16, #tpu.memory_space<vmem>>, vector<32x128xbf16>
    %c0_4 = arith.constant 0 : index
    %c0_5 = arith.constant 0 : index
    %5 = vector.load %arg4[%c0_4, %c0_5] : memref<128x128xbf16, #tpu.memory_space<vmem>>, vector<128x128xbf16>
    %cst = arith.constant dense<0.000000e+00> : vector<32x128xf32>
    %6 = tpu.matmul %4, %5, %cst {dimension_numbers = #tpu.dot_dimension_numbers<[1], [0], [0], [1], [0, 0, 1, 1], [], []>} : vector<32x128xbf16>, vector<128x128xbf16>, vector<32x128xf32> -> vector<32x128xf32>
    %7 = arith.addf %3, %6 : vector<32x128xf32>
    %c0_6 = arith.constant 0 : index
    %c0_7 = arith.constant 0 : index
    %8 = vector.load %arg7[%c0_6, %c0_7] : memref<32x128xf32, #tpu.memory_space<vmem>>, vector<32x128xf32>
    tpu.vector_store %arg7[%c0_6, %c0_7], %7 {strides = array<i32>} : memref<32x128xf32, #tpu.memory_space<vmem>>, vector<32x128xf32>,
    %c0_i32_8 = arith.constant 0 : i32
    %9 = arith.cmpi eq, %arg2, %c0_i32_8 : i32
    %10 = arith.extui %9 : i1 to i32
    %c0_i32_9 = arith.constant 0 : i32
    %11 = arith.cmpi ne, %10, %c0_i32_9 : i32
    scf.if %11 {
      %c0_10 = arith.constant 0 : index
      %c0_11 = arith.constant 0 : index
      %12 = vector.load %arg7[%c0_10, %c0_11] : memref<32x128xf32, #tpu.memory_space<vmem>>, vector<32x128xf32>
      %c0_12 = arith.constant 0 : index
      %c0_13 = arith.constant 0 : index
      %13 = vector.load %arg5[%c0_12, %c0_13] : memref<1x128xf32, #tpu.memory_space<vmem>>, vector<1x128xf32>
      %14 = vector.broadcast %13 : vector<1x128xf32> to vector<32x128xf32>
      %15 = arith.addf %12, %14 : vector<32x128xf32>
      %c0_14 = arith.constant 0 : index
      %c0_15 = arith.constant 0 : index
      %16 = vector.load %arg7[%c0_14, %c0_15] : memref<32x128xf32, #tpu.memory_space<vmem>>, vector<32x128xf32>
      tpu.vector_store %arg7[%c0_14, %c0_15], %15 {strides = array<i32>} : memref<32x128xf32, #tpu.memory_space<vmem>>, vector<32x128xf32>,
    } else {
    }
    return
  }
  func.func @transform_0(%arg0: i32, %arg1: i32, %arg2: i32) -> (i32, i32) {
    %c0_i32 = arith.constant 0 : i32
    return %arg0, %arg2 : i32, i32
  }
  func.func @transform_1(%arg0: i32, %arg1: i32, %arg2: i32) -> (i32, i32) {
    %c0_i32 = arith.constant 0 : i32
    return %arg2, %arg1 : i32, i32
  }
  func.func @transform_2(%arg0: i32, %arg1: i32, %arg2: i32) -> (i32, i32) {
    %c0_i32 = arith.constant 0 : i32
    %c0_i32_0 = arith.constant 0 : i32
    return %c0_i32, %arg1 : i32, i32
  }
  func.func @transform_3(%arg0: i32, %arg1: i32, %arg2: i32) -> (i32, i32) {
    %c0_i32 = arith.constant 0 : i32
    %c0_i32_0 = arith.constant 0 : i32
    return %c0_i32, %arg1 : i32, i32
  }
  func.func @transform_4(%arg0: i32, %arg1: i32, %arg2: i32) -> (i32, i32) {
    %c0_i32 = arith.constant 0 : i32
    return %arg0, %arg1 : i32, i32
  }
}

module attributes {stable_mosaic.version = 11 : i64} {
  func.func @_bn_prelu_kernel(%arg0: i32, %arg1: memref<128x128xf32, #tpu.memory_space<vmem>>, %arg2: memref<128x128xf32, #tpu.memory_space<vmem>>) attributes {dimension_semantics = [#tpu.dimension_semantics<parallel>], iteration_bounds = array<i64: 1>, scalar_prefetch = 0 : i64, scratch_operands = 0 : i64, tpu.core_type = #tpu.core_type<tc>, window_params = [{transform_indices = @transform_0, window_bounds = array<i64: 128, 128>}, {transform_indices = @transform_1, window_bounds = array<i64: 128, 128>}]} {
    %c0 = arith.constant 0 : index
    %c0_0 = arith.constant 0 : index
    %0 = vector.load %arg1[%c0, %c0_0] : memref<128x128xf32, #tpu.memory_space<vmem>>, vector<128x128xf32>
    %cst = arith.constant dense<0.000000e+00> : vector<128xf32>
    %1 = vector.multi_reduction <add>, %0, %cst [0] : vector<128x128xf32> to vector<128xf32>
    %2 = vector.shape_cast %1 : vector<128xf32> to vector<1x128xf32>
    %cst_1 = arith.constant 1.280000e+02 : f32
    %3 = vector.broadcast %cst_1 : f32 to vector<1x128xf32>
    %4 = arith.divf %2, %3 : vector<1x128xf32>
    %5 = vector.broadcast %4 : vector<1x128xf32> to vector<128x128xf32>
    %6 = arith.subf %0, %5 : vector<128x128xf32>
    %7 = arith.mulf %6, %6 : vector<128x128xf32>
    %cst_2 = arith.constant dense<0.000000e+00> : vector<128xf32>
    %8 = vector.multi_reduction <add>, %7, %cst_2 [0] : vector<128x128xf32> to vector<128xf32>
    %9 = vector.shape_cast %8 : vector<128xf32> to vector<1x128xf32>
    %cst_3 = arith.constant 1.280000e+02 : f32
    %10 = vector.broadcast %cst_3 : f32 to vector<1x128xf32>
    %11 = arith.divf %9, %10 : vector<1x128xf32>
    %cst_4 = arith.constant 9.99999974E-6 : f32
    %12 = vector.broadcast %cst_4 : f32 to vector<1x128xf32>
    %13 = arith.addf %11, %12 : vector<1x128xf32>
    %14 = math.rsqrt %13 : vector<1x128xf32>
    %15 = vector.broadcast %14 : vector<1x128xf32> to vector<128x128xf32>
    %16 = arith.mulf %6, %15 : vector<128x128xf32>
    %cst_5 = arith.constant 0.000000e+00 : f32
    %17 = vector.broadcast %cst_5 : f32 to vector<128x128xf32>
    %18 = arith.cmpf oge, %16, %17 : vector<128x128xf32>
    %cst_6 = arith.constant 2.500000e-01 : f32
    %19 = vector.broadcast %cst_6 : f32 to vector<128x128xf32>
    %20 = arith.mulf %19, %16 : vector<128x128xf32>
    %21 = arith.select %18, %16, %20 : vector<128x128xi1>, vector<128x128xf32>
    %c0_7 = arith.constant 0 : index
    %c0_8 = arith.constant 0 : index
    %22 = vector.load %arg2[%c0_7, %c0_8] : memref<128x128xf32, #tpu.memory_space<vmem>>, vector<128x128xf32>
    tpu.vector_store %arg2[%c0_7, %c0_8], %21 {strides = array<i32>} : memref<128x128xf32, #tpu.memory_space<vmem>>, vector<128x128xf32>,
    return
  }
  func.func @transform_0(%arg0: i32) -> (i32, i32) {
    %c0_i32 = arith.constant 0 : i32
    %c0_i32_0 = arith.constant 0 : i32
    return %c0_i32, %arg0 : i32, i32
  }
  func.func @transform_1(%arg0: i32) -> (i32, i32) {
    %c0_i32 = arith.constant 0 : i32
    %c0_i32_0 = arith.constant 0 : i32
    return %c0_i32, %arg0 : i32, i32
  }
}

module attributes {stable_mosaic.version = 11 : i64} {
  func.func @_matmul_kernel(%arg0: i32, %arg1: i32, %arg2: i32, %arg3: memref<16x1024xbf16, #tpu.memory_space<vmem>>, %arg4: memref<1024x128xbf16, #tpu.memory_space<vmem>>, %arg5: memref<1x128xf32, #tpu.memory_space<vmem>>, %arg6: memref<1x128xf32, #tpu.memory_space<vmem>>, %arg7: memref<16x128xf32, #tpu.memory_space<vmem>>) attributes {dimension_semantics = [#tpu.dimension_semantics<parallel>, #tpu.dimension_semantics<parallel>, #tpu.dimension_semantics<arbitrary>], iteration_bounds = array<i64: 1, 1, 1>, scalar_prefetch = 0 : i64, scratch_operands = 0 : i64, tpu.core_type = #tpu.core_type<tc>, window_params = [{transform_indices = @transform_0, window_bounds = array<i64: 16, 1024>}, {transform_indices = @transform_1, window_bounds = array<i64: 1024, 128>}, {transform_indices = @transform_2, window_bounds = array<i64: 1, 128>}, {transform_indices = @transform_3, window_bounds = array<i64: 1, 128>}, {transform_indices = @transform_4, window_bounds = array<i64: 16, 128>}]} {
    %c0_i32 = arith.constant 0 : i32
    %0 = arith.cmpi eq, %arg2, %c0_i32 : i32
    %1 = arith.extui %0 : i1 to i32
    %c0_i32_0 = arith.constant 0 : i32
    %2 = arith.cmpi ne, %1, %c0_i32_0 : i32
    scf.if %2 {
      %cst_10 = arith.constant 0.000000e+00 : f32
      %12 = vector.broadcast %cst_10 : f32 to vector<16x128xf32>
      %c0_11 = arith.constant 0 : index
      %c0_12 = arith.constant 0 : index
      %13 = vector.load %arg7[%c0_11, %c0_12] : memref<16x128xf32, #tpu.memory_space<vmem>>, vector<16x128xf32>
      tpu.vector_store %arg7[%c0_11, %c0_12], %12 {strides = array<i32>} : memref<16x128xf32, #tpu.memory_space<vmem>>, vector<16x128xf32>,
    } else {
    }
    %c0 = arith.constant 0 : index
    %c0_1 = arith.constant 0 : index
    %3 = vector.load %arg7[%c0, %c0_1] : memref<16x128xf32, #tpu.memory_space<vmem>>, vector<16x128xf32>
    %c0_2 = arith.constant 0 : index
    %c0_3 = arith.constant 0 : index
    %4 = vector.load %arg3[%c0_2, %c0_3] : memref<16x1024xbf16, #tpu.memory_space<vmem>>, vector<16x1024xbf16>
    %c0_4 = arith.constant 0 : index
    %c0_5 = arith.constant 0 : index
    %5 = vector.load %arg4[%c0_4, %c0_5] : memref<1024x128xbf16, #tpu.memory_space<vmem>>, vector<1024x128xbf16>
    %cst = arith.constant dense<0.000000e+00> : vector<16x128xf32>
    %6 = tpu.matmul %4, %5, %cst {dimension_numbers = #tpu.dot_dimension_numbers<[1], [0], [0], [1], [0, 0, 1, 1], [], []>} : vector<16x1024xbf16>, vector<1024x128xbf16>, vector<16x128xf32> -> vector<16x128xf32>
    %7 = arith.addf %3, %6 : vector<16x128xf32>
    %c0_6 = arith.constant 0 : index
    %c0_7 = arith.constant 0 : index
    %8 = vector.load %arg7[%c0_6, %c0_7] : memref<16x128xf32, #tpu.memory_space<vmem>>, vector<16x128xf32>
    tpu.vector_store %arg7[%c0_6, %c0_7], %7 {strides = array<i32>} : memref<16x128xf32, #tpu.memory_space<vmem>>, vector<16x128xf32>,
    %c0_i32_8 = arith.constant 0 : i32
    %9 = arith.cmpi eq, %arg2, %c0_i32_8 : i32
    %10 = arith.extui %9 : i1 to i32
    %c0_i32_9 = arith.constant 0 : i32
    %11 = arith.cmpi ne, %10, %c0_i32_9 : i32
    scf.if %11 {
      %c0_10 = arith.constant 0 : index
      %c0_11 = arith.constant 0 : index
      %12 = vector.load %arg7[%c0_10, %c0_11] : memref<16x128xf32, #tpu.memory_space<vmem>>, vector<16x128xf32>
      %c0_12 = arith.constant 0 : index
      %c0_13 = arith.constant 0 : index
      %13 = vector.load %arg5[%c0_12, %c0_13] : memref<1x128xf32, #tpu.memory_space<vmem>>, vector<1x128xf32>
      %14 = vector.broadcast %13 : vector<1x128xf32> to vector<16x128xf32>
      %15 = arith.addf %12, %14 : vector<16x128xf32>
      %c0_14 = arith.constant 0 : index
      %c0_15 = arith.constant 0 : index
      %16 = vector.load %arg6[%c0_14, %c0_15] : memref<1x128xf32, #tpu.memory_space<vmem>>, vector<1x128xf32>
      %cst_16 = arith.constant 0.000000e+00 : f32
      %17 = vector.broadcast %cst_16 : f32 to vector<1x128xf32>
      %18 = arith.cmpf ogt, %16, %17 : vector<1x128xf32>
      %19 = math.absf %15 : vector<16x128xf32>
      %cst_17 = arith.constant 0.000000e+00 : f32
      %20 = vector.broadcast %cst_17 : f32 to vector<16x128xf32>
      %21 = arith.subf %20, %19 : vector<16x128xf32>
      %22 = math.exp %21 : vector<16x128xf32>
      %cst_18 = arith.constant 1.000000e+00 : f32
      %23 = vector.broadcast %cst_18 : f32 to vector<16x128xf32>
      %24 = arith.addf %23, %22 : vector<16x128xf32>
      %25 = math.log %24 : vector<16x128xf32>
      %cst_19 = arith.constant 0.000000e+00 : f32
      %26 = vector.broadcast %cst_19 : f32 to vector<16x128xf32>
      %27 = arith.maximumf %15, %26 : vector<16x128xf32>
      %28 = arith.addf %25, %27 : vector<16x128xf32>
      %cst_20 = arith.constant 9.99999993E-9 : f32
      %29 = vector.broadcast %cst_20 : f32 to vector<16x128xf32>
      %30 = arith.addf %28, %29 : vector<16x128xf32>
      %31 = vector.shape_cast %18 : vector<1x128xi1> to vector<1x128xi1>
      %32 = vector.broadcast %31 : vector<1x128xi1> to vector<16x128xi1>
      %33 = arith.select %32, %30, %15 : vector<16x128xi1>, vector<16x128xf32>
      %c0_21 = arith.constant 0 : index
      %c0_22 = arith.constant 0 : index
      %34 = vector.load %arg7[%c0_21, %c0_22] : memref<16x128xf32, #tpu.memory_space<vmem>>, vector<16x128xf32>
      tpu.vector_store %arg7[%c0_21, %c0_22], %33 {strides = array<i32>} : memref<16x128xf32, #tpu.memory_space<vmem>>, vector<16x128xf32>,
    } else {
    }
    return
  }
  func.func @transform_0(%arg0: i32, %arg1: i32, %arg2: i32) -> (i32, i32) {
    %c0_i32 = arith.constant 0 : i32
    return %arg0, %arg2 : i32, i32
  }
  func.func @transform_1(%arg0: i32, %arg1: i32, %arg2: i32) -> (i32, i32) {
    %c0_i32 = arith.constant 0 : i32
    return %arg2, %arg1 : i32, i32
  }
  func.func @transform_2(%arg0: i32, %arg1: i32, %arg2: i32) -> (i32, i32) {
    %c0_i32 = arith.constant 0 : i32
    %c0_i32_0 = arith.constant 0 : i32
    return %c0_i32, %arg1 : i32, i32
  }
  func.func @transform_3(%arg0: i32, %arg1: i32, %arg2: i32) -> (i32, i32) {
    %c0_i32 = arith.constant 0 : i32
    %c0_i32_0 = arith.constant 0 : i32
    return %c0_i32, %arg1 : i32, i32
  }
  func.func @transform_4(%arg0: i32, %arg1: i32, %arg2: i32) -> (i32, i32) {
    %c0_i32 = arith.constant 0 : i32
    return %arg0, %arg1 : i32, i32
  }
}

</mosaic_0001>

<bundles_post_ra>
// kernel: _lambda_.4
= control target key start
LH: loop header
LB: loop body
LE: loop exit
PB: predicated region body
PF: predicated region fallthrough
CT: control target
= control target key end

     0   :  { %9 = vsyncpa [#allocation3], 0  ;;  %s1003_s18 = smov [#allocation2]   ;;  %s1004_s20 = smov 256   ;;  %s1091_s0 = inlined_call_operand.vmem [shape: bf16[16,256], index: 0, kind: input, shape index: {}]   ;;  %s1092_s1 = inlined_call_operand.hbm [shape: bf16[256,512], index: 1, kind: input, shape index: {}]   ;;  %s1093_s2 = inlined_call_operand.vmem [shape: f32[1,512], index: 2, kind: input, shape index: {}]   ;;  %s1094_s3 = inlined_call_operand.vmem [shape: f32[1,512], index: 3, kind: input, shape index: {}]   ;;  %s1095_s4 = inlined_call_operand.vmem [shape: f32[16,512], index: 4, kind: output, shape index: {}]  }
   0x1   :  { %s16_s17 = sshll.u32 %s1092_s1, 4  ;;  %s18_s19 = sshll.u32 %s1003_s18, 4  ;;  %s17_s17 = int_to_ptr.hbm [resolvable:$true] %s16_s17  ;;  %s19_s19 = int_to_ptr.vmem [resolvable:$true] %s18_s19 }
   0x2   :  { %s1005_s21 = smov 16  }
   0x3   :  { %24 = dma.hbm_to_vmem [thread:$0]  %s17_s17, 8192, %s19_s19, [#allocation3], %s1004_s20, %s1004_s20, %s1005_s21  }
   0x4   :  { %1001 = dma.done.wait [#allocation3], 8192  }
   0x5   :  { %1002 = vsyncadd [#allocation3], 4294959104  ;;  %v765_v0 = vld [vmem:[#allocation2 + $0xe0] sm:$0xf]  ;;  %v939_v1 = vld [vmem:[#allocation2 + $0xec] sm:$0xf0] }
   0x6   :  { %v893_v2 = vld [vmem:[#allocation2 + $0x1e0] sm:$0xf]  ;;  %v766_v3 = vor.u32 %v939_v1, %v765_v0  ;;  %v971_v4 = vld [vmem:[#allocation2 + $0x1ec] sm:$0xf0]  ;;  %v937_v5 = vld [vmem:[#allocation2 + $0xe4] sm:$0xf] }
   0x7   :  { %v767_v6 = vld [vmem:[#allocation2 + $0xf0] sm:$0xf0]  ;;  %v894_v7 = vor.u32 %v971_v4, %v893_v2  ;;  %v969_v9 = vld [vmem:[#allocation2 + $0x1e4] sm:$0xf]  ;;  %v749_v11 = vld [vmem:[#allocation2 + $0xc0] sm:$0xf] }
   0x8   :  { %v770_v8 = vor.u32 %v937_v5, %v767_v6  ;;  %v895_v10 = vld [vmem:[#allocation2 + $0x1f0] sm:$0xf0]  ;;  %449 = vmatpush.bf16.msra.mxu0 %v766_v3  ;;  %v935_v13 = vld [vmem:[#allocation2 + $0xcc] sm:$0xf0]  ;;  %v877_v14 = vld [vmem:[#allocation2 + $0x1c0] sm:$0xf] }
   0x9   :  { %v898_v12 = vor.u32 %v969_v9, %v895_v10  ;;  %v967_v15 = vld [vmem:[#allocation2 + $0x1cc] sm:$0xf0]  ;;  %463 = vmatpush.bf16.msra.mxu1 %v894_v7  ;;  %v750_v16 = vor.u32 %v935_v13, %v749_v11  ;;  %v933_v18 = vld [vmem:[#allocation2 + $0xc4] sm:$0xf]  ;;  %v751_v19 = vld [vmem:[#allocation2 + $0xd0] sm:$0xf0] }
   0xa   :  { %477 = vmatpush.bf16.msra.mxu2 %v770_v8  ;;  %v878_v17 = vor.u32 %v967_v15, %v877_v14  ;;  %v965_v20 = vld [vmem:[#allocation2 + $0x1c4] sm:$0xf]  ;;  %v754_v21 = vor.u32 %v933_v18, %v751_v19  ;;  %v879_v22 = vld [vmem:[#allocation2 + $0x1d0] sm:$0xf0]  ;;  %v733_v23 = vld [vmem:[#allocation2 + $0xa0] sm:$0xf] }
   0xb   :  { %491 = vmatpush.bf16.msra.mxu3 %v898_v12  ;;  %v931_v24 = vld [vmem:[#allocation2 + $0xac] sm:$0xf0]  ;;  %v882_v25 = vor.u32 %v965_v20, %v879_v22  ;;  %v861_v26 = vld [vmem:[#allocation2 + $0x1a0] sm:$0xf]  ;;  %v929_v28 = vld [vmem:[#allocation2 + $0xa4] sm:$0xf] }
   0xc   :  { %v963_v27 = vld [vmem:[#allocation2 + $0x1ac] sm:$0xf0]  ;;  %450 = vmatpush.bf16.msra.mxu0 %v750_v16  ;;  %v734_v29 = vor.u32 %v931_v24, %v733_v23  ;;  %v735_v30 = vld [vmem:[#allocation2 + $0xb0] sm:$0xf0]  ;;  %v961_v31 = vld [vmem:[#allocation2 + $0x1a4] sm:$0xf] }
   0xd   :  { %v863_v32 = vld [vmem:[#allocation2 + $0x1b0] sm:$0xf0]  ;;  %464 = vmatpush.bf16.msra.mxu1 %v878_v17  ;;  %v862_v33 = vor.u32 %v963_v27, %v861_v26  ;;  %v738_v34 = vor.u32 %v929_v28, %v735_v30  ;;  %v717_v35 = vld [vmem:[#allocation2 + $0x80] sm:$0xf]  ;;  %v927_v36 = vld [vmem:[#allocation2 + $0x8c] sm:$0xf0] }
   0xe   :  { %478 = vmatpush.bf16.msra.mxu2 %v754_v21  ;;  %v845_v37 = vld [vmem:[#allocation2 + $0x180] sm:$0xf]  ;;  %v866_v38 = vor.u32 %v961_v31, %v863_v32  ;;  %v959_v39 = vld [vmem:[#allocation2 + $0x18c] sm:$0xf0]  ;;  %v925_v40 = vld [vmem:[#allocation2 + $0x84] sm:$0xf]  ;;  %v718_v44 = vor.u32 %v927_v36, %v717_v35 }
   0xf   :  { %492 = vmatpush.bf16.msra.mxu3 %v882_v25  ;;  %v719_v41 = vld [vmem:[#allocation2 + $0x90] sm:$0xf0]  ;;  %v957_v42 = vld [vmem:[#allocation2 + $0x184] sm:$0xf]  ;;  %v846_v45 = vor.u32 %v959_v39, %v845_v37  ;;  %v701_v47 = vld [vmem:[#allocation2 + $0x60] sm:$0xf] }
  0x10   :  { %v847_v43 = vld [vmem:[#allocation2 + $0x190] sm:$0xf0]  ;;  %451 = vmatpush.bf16.msra.mxu0 %v734_v29  ;;  %v722_v46 = vor.u32 %v925_v40, %v719_v41  ;;  %v923_v48 = vld [vmem:[#allocation2 + $0x6c] sm:$0xf0]  ;;  %v829_v49 = vld [vmem:[#allocation2 + $0x160] sm:$0xf] }
  0x11   :  { %465 = vmatpush.bf16.msra.mxu1 %v862_v33  ;;  %v850_v50 = vor.u32 %v957_v42, %v847_v43  ;;  %v955_v51 = vld [vmem:[#allocation2 + $0x16c] sm:$0xf0]  ;;  %v921_v52 = vld [vmem:[#allocation2 + $0x64] sm:$0xf]  ;;  %v703_v53 = vld [vmem:[#allocation2 + $0x70] sm:$0xf0]  ;;  %v702_v56 = vor.u32 %v923_v48, %v701_v47 }
  0x12   :  { %479 = vmatpush.bf16.msra.mxu2 %v738_v34  ;;  %v953_v54 = vld [vmem:[#allocation2 + $0x164] sm:$0xf]  ;;  %v831_v55 = vld [vmem:[#allocation2 + $0x170] sm:$0xf0]  ;;  %v830_v57 = vor.u32 %v955_v51, %v829_v49  ;;  %v706_v58 = vor.u32 %v921_v52, %v703_v53  ;;  %v685_v59 = vld [vmem:[#allocation2 + $0x40] sm:$0xf] }
  0x13   :  { %493 = vmatpush.bf16.msra.mxu3 %v866_v38  ;;  %v919_v60 = vld [vmem:[#allocation2 + $0x4c] sm:$0xf0]  ;;  %v813_v61 = vld [vmem:[#allocation2 + $0x140] sm:$0xf]  ;;  %v834_v62 = vor.u32 %v953_v54, %v831_v55  ;;  %v917_v0 = vld [vmem:[#allocation2 + $0x44] sm:$0xf] }
  0x14   :  { %452 = vmatpush.bf16.msra.mxu0 %v718_v44  ;;  %v951_v63 = vld [vmem:[#allocation2 + $0x14c] sm:$0xf0]  ;;  %v687_v1 = vld [vmem:[#allocation2 + $0x50] sm:$0xf0]  ;;  %v949_v2 = vld [vmem:[#allocation2 + $0x144] sm:$0xf]  ;;  %v686_v4 = vor.u32 %v919_v60, %v685_v59 }
  0x15   :  { %466 = vmatpush.bf16.msra.mxu1 %v846_v45  ;;  %v815_v3 = vld [vmem:[#allocation2 + $0x150] sm:$0xf0]  ;;  %v814_v5 = vor.u32 %v951_v63, %v813_v61  ;;  %v690_v6 = vor.u32 %v917_v0, %v687_v1  ;;  %v669_v7 = vld [vmem:[#allocation2 + $0x20] sm:$0xf]  ;;  %v915_v8 = vld [vmem:[#allocation2 + $0x2c] sm:$0xf0] }
  0x16   :  { %480 = vmatpush.bf16.msra.mxu2 %v722_v46  ;;  %v797_v9 = vld [vmem:[#allocation2 + $0x120] sm:$0xf]  ;;  %v818_v10 = vor.u32 %v949_v2, %v815_v3  ;;  %v947_v11 = vld [vmem:[#allocation2 + $0x12c] sm:$0xf0]  ;;  %v913_v12 = vld [vmem:[#allocation2 + $0x24] sm:$0xf]  ;;  %v670_v16 = vor.u32 %v915_v8, %v669_v7 }
  0x17   :  { %494 = vmatpush.bf16.msra.mxu3 %v850_v50  ;;  %v671_v13 = vld [vmem:[#allocation2 + $0x30] sm:$0xf0]  ;;  %v945_v14 = vld [vmem:[#allocation2 + $0x124] sm:$0xf]  ;;  %v653_v17 = vld [vmem:[#allocation2] sm:$0xf]  ;;  %v798_v20 = vor.u32 %v947_v11, %v797_v9 }
  0x18   :  { %453 = vmatpush.bf16.msra.mxu0 %v702_v56  ;;  %v799_v15 = vld [vmem:[#allocation2 + $0x130] sm:$0xf0]  ;;  %v911_v18 = vld [vmem:[#allocation2 + $0xc] sm:$0xf0]  ;;  %v781_v19 = vld [vmem:[#allocation2 + $0x100] sm:$0xf]  ;;  %v674_v21 = vor.u32 %v913_v12, %v671_v13 }
  0x19   :  { %467 = vmatpush.bf16.msra.mxu1 %v830_v57  ;;  %v943_v22 = vld [vmem:[#allocation2 + $0x10c] sm:$0xf0]  ;;  %v909_v23 = vld [vmem:[#allocation2 + $0x4] sm:$0xf]  ;;  %v655_v24 = vld [vmem:[#allocation2 + $0x10] sm:$0xf0]  ;;  %v802_v25 = vor.u32 %v945_v14, %v799_v15  ;;  %v654_v32 = vor.u32 %v911_v18, %v653_v17 }
  0x1a   :  { %481 = vmatpush.bf16.msra.mxu2 %v706_v58  ;;  %v941_v26 = vld [vmem:[#allocation2 + $0x104] sm:$0xf]  ;;  %v783_v27 = vld [vmem:[#allocation2 + $0x110] sm:$0xf0]  ;;  %v773_v28 = vld [vmem:[#allocation2 + $0xe8] sm:$0xf]  ;;  %v782_v36 = vor.u32 %v943_v22, %v781_v19  ;;  %v658_v37 = vor.u32 %v909_v23, %v655_v24 }
  0x1b   :  { %495 = vmatpush.bf16.msra.mxu3 %v834_v62  ;;  %v940_v29 = vld [vmem:[#allocation2 + $0xf4] sm:$0xf0]  ;;  %v901_v30 = vld [vmem:[#allocation2 + $0x1e8] sm:$0xf]  ;;  %v938_v33 = vld [vmem:[#allocation2 + $0xec] sm:$0xf]  ;;  %v786_v41 = vor.u32 %v941_v26, %v783_v27 }
  0x1c   :  { %454 = vmatpush.bf16.msra.mxu0 %v686_v4  ;;  %v972_v31 = vld [vmem:[#allocation2 + $0x1f4] sm:$0xf0]  ;;  %v775_v34 = vld [vmem:[#allocation2 + $0xf8] sm:$0xf0]  ;;  %v970_v35 = vld [vmem:[#allocation2 + $0x1ec] sm:$0xf]  ;;  %v774_v42 = vor.u32 %v940_v29, %v773_v28 }
  0x1d   :  { %468 = vmatpush.bf16.msra.mxu1 %v814_v5  ;;  %v903_v38 = vld [vmem:[#allocation2 + $0x1f8] sm:$0xf0]  ;;  %v645_v39 = vld [vmem:[%s1091_s0] sm:$0xf]  ;;  %v908_v40 = vld [vmem:[%s1091_s0 + $0x4] sm:$0xf0]  ;;  %v902_v45 = vor.u32 %v972_v31, %v901_v30  ;;  %v778_v46 = vor.u32 %v938_v33, %v775_v34 }
  0x1e   :  { %482 = vmatpush.bf16.msra.mxu2 %v690_v6  ;;  %v907_v43 = vld [vmem:[%s1091_s0 + $0x4] sm:$0xf]  ;;  %v647_v44 = vld [vmem:[%s1091_s0 + $0x8] sm:$0xf0]  ;;  %v757_v47 = vld [vmem:[#allocation2 + $0xc8] sm:$0xf]  ;;  %v906_v50 = vor.u32 %v970_v35, %v903_v38  ;;  %v1046_v54 = vor.u32 %v908_v40, %v645_v39 }
  0x1f   :  { %496 = vmatpush.bf16.msra.mxu3 %v818_v10  ;;  %v936_v48 = vld [vmem:[#allocation2 + $0xd4] sm:$0xf0]  ;;  %v885_v49 = vld [vmem:[#allocation2 + $0x1c8] sm:$0xf]  ;;  %v934_v52 = vld [vmem:[#allocation2 + $0xcc] sm:$0xf]  ;;  %v1048_v57 = vor.u32 %v907_v43, %v647_v44 }
  0x20   :  { %455 = vmatpush.bf16.msra.mxu0 %v670_v16  ;;  %v968_v51 = vld [vmem:[#allocation2 + $0x1d4] sm:$0xf0]  ;;  %v759_v53 = vld [vmem:[#allocation2 + $0xd8] sm:$0xf0]  ;;  %v966_v55 = vld [vmem:[#allocation2 + $0x1cc] sm:$0xf]  ;;  %v758_v58 = vor.u32 %v936_v48, %v757_v47 }
  0x21   :  { %469 = vmatpush.bf16.msra.mxu1 %v798_v20  ;;  %v887_v56 = vld [vmem:[#allocation2 + $0x1d8] sm:$0xf0]  ;;  %v886_v59 = vor.u32 %v968_v51, %v885_v49  ;;  %v762_v60 = vor.u32 %v934_v52, %v759_v53  ;;  %v741_v61 = vld [vmem:[#allocation2 + $0xa8] sm:$0xf]  ;;  %v932_v62 = vld [vmem:[#allocation2 + $0xb4] sm:$0xf0] }
  0x22   :  { %483 = vmatpush.bf16.msra.mxu2 %v674_v21  ;;  %v869_v63 = vld [vmem:[#allocation2 + $0x1a8] sm:$0xf]  ;;  %v890_v0 = vor.u32 %v966_v55, %v887_v56  ;;  %v964_v1 = vld [vmem:[#allocation2 + $0x1b4] sm:$0xf0]  ;;  %v930_v2 = vld [vmem:[#allocation2 + $0xac] sm:$0xf]  ;;  %v742_v6 = vor.u32 %v932_v62, %v741_v61 }
  0x23   :  { %497 = vmatpush.bf16.msra.mxu3 %v802_v25  ;;  %v743_v3 = vld [vmem:[#allocation2 + $0xb8] sm:$0xf0]  ;;  %v962_v4 = vld [vmem:[#allocation2 + $0x1ac] sm:$0xf]  ;;  %v870_v7 = vor.u32 %v964_v1, %v869_v63  ;;  %v725_v9 = vld [vmem:[#allocation2 + $0x88] sm:$0xf] }
  0x24   :  { %456 = vmatpush.bf16.msra.mxu0 %v654_v32  ;;  %v871_v5 = vld [vmem:[#allocation2 + $0x1b8] sm:$0xf0]  ;;  %v746_v8 = vor.u32 %v930_v2, %v743_v3  ;;  %v928_v10 = vld [vmem:[#allocation2 + $0x94] sm:$0xf0]  ;;  %v853_v11 = vld [vmem:[#allocation2 + $0x188] sm:$0xf] }
  0x25   :  { %470 = vmatpush.bf16.msra.mxu1 %v782_v36  ;;  %v874_v12 = vor.u32 %v962_v4, %v871_v5  ;;  %v960_v13 = vld [vmem:[#allocation2 + $0x194] sm:$0xf0]  ;;  %v926_v14 = vld [vmem:[#allocation2 + $0x8c] sm:$0xf]  ;;  %v727_v15 = vld [vmem:[#allocation2 + $0x98] sm:$0xf0]  ;;  %v726_v18 = vor.u32 %v928_v10, %v725_v9 }
  0x26   :  { %484 = vmatpush.bf16.msra.mxu2 %v658_v37  ;;  %v958_v16 = vld [vmem:[#allocation2 + $0x18c] sm:$0xf]  ;;  %v855_v17 = vld [vmem:[#allocation2 + $0x198] sm:$0xf0]  ;;  %v854_v19 = vor.u32 %v960_v13, %v853_v11  ;;  %v730_v20 = vor.u32 %v926_v14, %v727_v15  ;;  %v709_v21 = vld [vmem:[#allocation2 + $0x68] sm:$0xf] }
  0x27   :  { %498 = vmatpush.bf16.msra.mxu3 %v786_v41  ;;  %457 = vmatmul.bf16.vlgmr.msra.gmra.mxu0 %v1046_v54  ;;  %v924_v22 = vld [vmem:[#allocation2 + $0x74] sm:$0xf0]  ;;  %v837_v23 = vld [vmem:[#allocation2 + $0x168] sm:$0xf]  ;;  %v858_v24 = vor.u32 %v958_v16, %v855_v17  ;;  %v922_v26 = vld [vmem:[#allocation2 + $0x6c] sm:$0xf] }
  0x28   :  { %505 = vmatpush.bf16.msrb.mxu0 %v774_v42  ;;  %471 = vmatmul.bf16.vlgmr.msra.gmra.mxu1 %v1048_v57  ;;  %v956_v25 = vld [vmem:[#allocation2 + $0x174] sm:$0xf0]  ;;  %v711_v27 = vld [vmem:[#allocation2 + $0x78] sm:$0xf0]  ;;  %v954_v28 = vld [vmem:[#allocation2 + $0x16c] sm:$0xf]  ;;  %v710_v30 = vor.u32 %v924_v22, %v709_v21 }
  0x29   :  { %519 = vmatpush.bf16.msrb.mxu1 %v902_v45  ;;  %485 = vmatmul.bf16.vlgmr.msra.gmra.mxu2 %v1046_v54  ;;  %v839_v29 = vld [vmem:[#allocation2 + $0x178] sm:$0xf0]  ;;  %v838_v31 = vor.u32 %v956_v25, %v837_v23  ;;  %v714_v32 = vor.u32 %v922_v26, %v711_v27  ;;  %v693_v33 = vld [vmem:[#allocation2 + $0x48] sm:$0xf]  ;;  %v920_v34 = vld [vmem:[#allocation2 + $0x54] sm:$0xf0] }
  0x2a   :  { %533 = vmatpush.bf16.msrb.mxu2 %v778_v46  ;;  %499 = vmatmul.bf16.vlgmr.msra.gmra.mxu3 %v1048_v57  ;;  %v821_v35 = vld [vmem:[#allocation2 + $0x148] sm:$0xf]  ;;  %v842_v36 = vor.u32 %v954_v28, %v839_v29  ;;  %v952_v37 = vld [vmem:[#allocation2 + $0x154] sm:$0xf0]  ;;  %v918_v38 = vld [vmem:[#allocation2 + $0x4c] sm:$0xf]  ;;  %v694_v42 = vor.u32 %v920_v34, %v693_v33 }
  0x2b   :  { %547 = vmatpush.bf16.msrb.mxu3 %v906_v50  ;;  %v695_v39 = vld [vmem:[#allocation2 + $0x58] sm:$0xf0]  ;;  %v950_v40 = vld [vmem:[#allocation2 + $0x14c] sm:$0xf]  ;;  %v822_v43 = vor.u32 %v952_v37, %v821_v35  ;;  %v677_v45 = vld [vmem:[#allocation2 + $0x28] sm:$0xf] }
  0x2c   :  { %506 = vmatpush.bf16.msrb.mxu0 %v758_v58  ;;  %v823_v41 = vld [vmem:[#allocation2 + $0x158] sm:$0xf0]  ;;  %v698_v44 = vor.u32 %v918_v38, %v695_v39  ;;  %v916_v46 = vld [vmem:[#allocation2 + $0x34] sm:$0xf0]  ;;  %v805_v47 = vld [vmem:[#allocation2 + $0x128] sm:$0xf] }
  0x2d   :  { %520 = vmatpush.bf16.msrb.mxu1 %v886_v59  ;;  %v826_v48 = vor.u32 %v950_v40, %v823_v41  ;;  %v948_v49 = vld [vmem:[#allocation2 + $0x134] sm:$0xf0]  ;;  %v914_v50 = vld [vmem:[#allocation2 + $0x2c] sm:$0xf]  ;;  %v679_v51 = vld [vmem:[#allocation2 + $0x38] sm:$0xf0]  ;;  %v678_v55 = vor.u32 %v916_v46, %v677_v45 }
  0x2e   :  { %534 = vmatpush.bf16.msrb.mxu2 %v762_v60  ;;  %v946_v52 = vld [vmem:[#allocation2 + $0x12c] sm:$0xf]  ;;  %v807_v53 = vld [vmem:[#allocation2 + $0x138] sm:$0xf0]  ;;  %v806_v56 = vor.u32 %v948_v49, %v805_v47  ;;  %v682_v58 = vor.u32 %v914_v50, %v679_v51  ;;  %v661_v59 = vld [vmem:[#allocation2 + $0x8] sm:$0xf] }
  0x2f   :  { %548 = vmatpush.bf16.msrb.mxu3 %v890_v0  ;;  %v912_v60 = vld [vmem:[#allocation2 + $0x14] sm:$0xf0]  ;;  %v789_v61 = vld [vmem:[#allocation2 + $0x108] sm:$0xf]  ;;  %v810_v62 = vor.u32 %v946_v52, %v807_v53  ;;  %v910_v0 = vld [vmem:[#allocation2 + $0xc] sm:$0xf] }
  0x30   :  { %507 = vmatpush.bf16.msrb.mxu0 %v742_v6  ;;  %v944_v63 = vld [vmem:[#allocation2 + $0x114] sm:$0xf0]  ;;  %v663_v1 = vld [vmem:[#allocation2 + $0x18] sm:$0xf0]  ;;  %v942_v2 = vld [vmem:[#allocation2 + $0x10c] sm:$0xf]  ;;  %v662_v4 = vor.u32 %v912_v60, %v661_v59 }
  0x31   :  { %521 = vmatpush.bf16.msrb.mxu1 %v870_v7  ;;  %v791_v3 = vld [vmem:[#allocation2 + $0x118] sm:$0xf0]  ;;  %v790_v5 = vor.u32 %v944_v63, %v789_v61  ;;  %v666_v6 = vor.u32 %v910_v0, %v663_v1 }
  0x32   :  { %535 = vmatpush.bf16.msrb.mxu2 %v746_v8  ;;  %v794_v7 = vor.u32 %v942_v2, %v791_v3  ;;  %v1061_v8 = vld [vmem:[%s1093_s2] sm:$0xf] }
  0x33   :  { %549 = vmatpush.bf16.msrb.mxu3 %v874_v12  ;;  %v590_v12 = vperm.slane %v1061_v8, 0  ;;  %v591_v17 = vperm.slane %v1061_v8, 1 }
  0x34   :  { %508 = vmatpush.bf16.msrb.mxu0 %v726_v18 }
  0x35   :  { %522 = vmatpush.bf16.msrb.mxu1 %v854_v19 }
  0x36   :  { %536 = vmatpush.bf16.msrb.mxu2 %v730_v20 }
  0x37   :  { %550 = vmatpush.bf16.msrb.mxu3 %v858_v24 }
  0x38   :  { %509 = vmatpush.bf16.msrb.mxu0 %v710_v30 }
  0x39   :  { %523 = vmatpush.bf16.msrb.mxu1 %v838_v31 }
  0x3a   :  { %537 = vmatpush.bf16.msrb.mxu2 %v714_v32 }
  0x3b   :  { %551 = vmatpush.bf16.msrb.mxu3 %v842_v36  ;;  %v592_v36 = vperm.slane %v1061_v8, 2 }
  0x3c   :  { %510 = vmatpush.bf16.msrb.mxu0 %v694_v42 }
  0x3d   :  { %524 = vmatpush.bf16.msrb.mxu1 %v822_v43  ;;  %v593_v43 = vperm.slane %v1061_v8, 3 }
  0x3e   :  { %538 = vmatpush.bf16.msrb.mxu2 %v698_v44 }
  0x3f   :  { %552 = vmatpush.bf16.msrb.mxu3 %v826_v48 }
  0x40   :  { %511 = vmatpush.bf16.msrb.mxu0 %v678_v55 }
  0x41   :  { %525 = vmatpush.bf16.msrb.mxu1 %v806_v56 }
  0x42   :  { %539 = vmatpush.bf16.msrb.mxu2 %v682_v58 }
  0x43   :  { %553 = vmatpush.bf16.msrb.mxu3 %v810_v62 }
  0x44   :  { %512 = vmatpush.bf16.msrb.mxu0 %v662_v4 }
  0x45   :  { %526 = vmatpush.bf16.msrb.mxu1 %v790_v5 }
  0x46   :  { %540 = vmatpush.bf16.msrb.mxu2 %v666_v6 }
  0x47   :  { %554 = vmatpush.bf16.msrb.mxu3 %v794_v7  ;;  %513 = vmatmul.bf16.vlgmr.msrb.gmra.mxu0 %v1046_v54 }
  0x48   :  { %527 = vmatmul.bf16.vlgmr.msrb.gmra.mxu1 %v1048_v57 }
  0x49   :  { %541 = vmatmul.bf16.vlgmr.msrb.gmra.mxu2 %v1046_v54 }
  0x4a   :  { %555 = vmatmul.bf16.vlgmr.msrb.gmra.mxu3 %v1048_v57 }
  0xa4   :  { %v458_v9 = vpop.f32.mrf.mxu0 }
  0xa5   :  { %v472_v10 = vpop.f32.mrf.mxu1 }
  0xa6   :  { %v473_v11 = vadd.f32 %v472_v10, %v458_v9 }
  0xa8   :  { %v598_v14 = vadd.f32 %v590_v12, %v473_v11 }
  0xaa   :  { %vm606_vm0 = vcmp.ge.f32.partialorder %v598_v14, 0.0  ;;  %v614_v54 = vmul.f32 0.25, %v598_v14 }
  0xac   :  { %v486_v13 = vpop.f32.mrf.mxu2  ;;  %v460_v18 = vpop.f32.mrf.mxu0  ;;  %v622_v19 = vsel %vm606_vm0, %v598_v14, %v614_v54 }
  0xad   :  { %v500_v15 = vpop.f32.mrf.mxu3  ;;  %v474_v57 = vpop.f32.mrf.mxu1  ;;  %630 = vst [vmem:[%s1095_s4] sm:$0xff] %v622_v19 }
  0xae   :  { %v501_v16 = vadd.f32 %v500_v15, %v486_v13  ;;  %v475_v20 = vadd.f32 %v474_v57, %v460_v18 }
  0xb0   :  { %v599_v21 = vadd.f32 %v591_v17, %v501_v16  ;;  %v602_v24 = vadd.f32 %v590_v12, %v475_v20 }
  0xb2   :  { %vm607_vm1 = vcmp.ge.f32.partialorder %v599_v21, 0.0  ;;  %v615_v22 = vmul.f32 0.25, %v599_v21  ;;  %vm610_vm2 = vcmp.ge.f32.partialorder %v602_v24, 0.0  ;;  %v618_v28 = vmul.f32 0.25, %v602_v24 }
  0xb4   :  { %v488_v23 = vpop.f32.mrf.mxu2  ;;  %v623_v26 = vsel %vm607_vm1, %v599_v21, %v615_v22  ;;  %v626_v29 = vsel %vm610_vm2, %v602_v24, %v618_v28 }
  0xb5   :  { %v502_v25 = vpop.f32.mrf.mxu3  ;;  %631 = vst [vmem:[%s1095_s4 + $0x8] sm:$0xff] %v623_v26 }
  0xb6   :  { %v503_v27 = vadd.f32 %v502_v25, %v488_v23  ;;  %634 = vst [vmem:[%s1095_s4 + $0x20] sm:$0xff] %v626_v29 }
  0xb8   :  { %v603_v30 = vadd.f32 %v591_v17, %v503_v27 }
  0xba   :  { %vm611_vm3 = vcmp.ge.f32.partialorder %v603_v30, 0.0  ;;  %v619_v31 = vmul.f32 0.25, %v603_v30 }
  0xbc   :  { %v627_v32 = vsel %vm611_vm3, %v603_v30, %v619_v31 }
  0xbd   :  { %635 = vst [vmem:[%s1095_s4 + $0x28] sm:$0xff] %v627_v32 }
  0xc4   :  { %v514_v33 = vpop.f32.mrf.mxu0 }
  0xc5   :  { %v528_v34 = vpop.f32.mrf.mxu1 }
  0xc6   :  { %v529_v35 = vadd.f32 %v528_v34, %v514_v33 }
  0xc8   :  { %v600_v37 = vadd.f32 %v592_v36, %v529_v35 }
  0xca   :  { %vm608_vm4 = vcmp.ge.f32.partialorder %v600_v37, 0.0  ;;  %v616_v39 = vmul.f32 0.25, %v600_v37 }
  0xcc   :  { %v542_v38 = vpop.f32.mrf.mxu2  ;;  %v516_v41 = vpop.f32.mrf.mxu0  ;;  %v624_v45 = vsel %vm608_vm4, %v600_v37, %v616_v39 }
  0xcd   :  { %v556_v40 = vpop.f32.mrf.mxu3  ;;  %v530_v44 = vpop.f32.mrf.mxu1  ;;  %632 = vst [vmem:[%s1095_s4 + $0x10] sm:$0xff] %v624_v45 }
  0xce   :  { %v557_v42 = vadd.f32 %v556_v40, %v542_v38  ;;  %v531_v46 = vadd.f32 %v530_v44, %v516_v41 }
  0xd0   :  { %v601_v47 = vadd.f32 %v593_v43, %v557_v42  ;;  %v604_v48 = vadd.f32 %v592_v36, %v531_v46 }
  0xd2   :  { %vm609_vm5 = vcmp.ge.f32.partialorder %v601_v47, 0.0  ;;  %v617_v49 = vmul.f32 0.25, %v601_v47  ;;  %vm612_vm6 = vcmp.ge.f32.partialorder %v604_v48, 0.0  ;;  %v620_v51 = vmul.f32 0.25, %v604_v48 }
  0xd4   :  { %v544_v50 = vpop.f32.mrf.mxu2  ;;  %v625_v53 = vsel %vm609_vm5, %v601_v47, %v617_v49  ;;  %v628_v56 = vsel %vm612_vm6, %v604_v48, %v620_v51 }
  0xd5   :  { %v558_v52 = vpop.f32.mrf.mxu3  ;;  %633 = vst [vmem:[%s1095_s4 + $0x18] sm:$0xff] %v625_v53 }
  0xd6   :  { %v559_v55 = vadd.f32 %v558_v52, %v544_v50  ;;  %636 = vst [vmem:[%s1095_s4 + $0x30] sm:$0xff] %v628_v56 }
  0xd8   :  { %v605_v58 = vadd.f32 %v593_v43, %v559_v55 }
  0xda   :  { %vm613_vm7 = vcmp.ge.f32.partialorder %v605_v58, 0.0  ;;  %v621_v59 = vmul.f32 0.25, %v605_v58 }
  0xdc   :  { %v629_v60 = vsel %vm613_vm7, %v605_v58, %v621_v59 }
  0xdd   :  { %637 = vst [vmem:[%s1095_s4 + $0x38] sm:$0xff] %v629_v60 }
  0xde   :  { %642 = vsyncpa [#allocation3], 1 }

// kernel: _lambda_.5
= control target key start
LH: loop header
LB: loop body
LE: loop exit
PB: predicated region body
PF: predicated region fallthrough
CT: control target
= control target key end

     0   :  { %s289_s1 = inlined_call_operand.vmem [shape: bf16[128,128], index: 1, kind: input, shape index: {}]   ;;  %s290_s3 = inlined_call_operand.vmem [shape: f32[1,128], index: 3, kind: input, shape index: {}]   ;;  %s291_s2 = inlined_call_operand.vmem [shape: f32[1,128], index: 2, kind: input, shape index: {}]   ;;  %s292_s0 = inlined_call_operand.vmem [shape: bf16[32,128], index: 0, kind: input, shape index: {}]   ;;  %s293_s4 = inlined_call_operand.vmem [shape: f32[32,128], index: 4, kind: output, shape index: {}]  }
   0x1   :  { %v208_v0 = vld [vmem:[%s289_s1 + $0x38] sm:$0xff]  ;;  %v207_v1 = vld [vmem:[%s289_s1 + $0x30] sm:$0xff]  ;;  %v206_v2 = vld [vmem:[%s289_s1 + $0x28] sm:$0xff] }
   0x2   :  { %109 = vmatpush.bf16.msra.mxu0 %v208_v0  ;;  %209 = vmatpush.bf16.msra.mxu1 %v208_v0  ;;  %v205_v3 = vld [vmem:[%s289_s1 + $0x20] sm:$0xff]  ;;  %v204_v4 = vld [vmem:[%s289_s1 + $0x18] sm:$0xff]  ;;  %v203_v5 = vld [vmem:[%s289_s1 + $0x10] sm:$0xff] }
   0x3   :  { %v202_v6 = vld [vmem:[%s289_s1 + $0x8] sm:$0xff]  ;;  %v201_v7 = vld [vmem:[%s289_s1] sm:$0xff] }
   0x4   :  { %v199_v8 = vld [vmem:[%s292_s0] sm:$0xff]  ;;  %v200_v9 = vld [vmem:[%s292_s0 + $0x8] sm:$0xff] }
   0x5   :  { %v218_v10 = vld [vmem:[%s291_s2] ss:$0 sm:$0xff] }
   0x6   :  { %110 = vmatpush.bf16.msra.mxu0 %v207_v1  ;;  %210 = vmatpush.bf16.msra.mxu1 %v207_v1 }
   0xa   :  { %111 = vmatpush.bf16.msra.mxu0 %v206_v2  ;;  %211 = vmatpush.bf16.msra.mxu1 %v206_v2 }
   0xe   :  { %112 = vmatpush.bf16.msra.mxu0 %v205_v3  ;;  %212 = vmatpush.bf16.msra.mxu1 %v205_v3 }
  0x12   :  { %113 = vmatpush.bf16.msra.mxu0 %v204_v4  ;;  %213 = vmatpush.bf16.msra.mxu1 %v204_v4 }
  0x16   :  { %114 = vmatpush.bf16.msra.mxu0 %v203_v5  ;;  %214 = vmatpush.bf16.msra.mxu1 %v203_v5 }
  0x1a   :  { %115 = vmatpush.bf16.msra.mxu0 %v202_v6  ;;  %215 = vmatpush.bf16.msra.mxu1 %v202_v6 }
  0x1e   :  { %116 = vmatpush.bf16.msra.mxu0 %v201_v7  ;;  %216 = vmatpush.bf16.msra.mxu1 %v201_v7 }
  0x21   :  { %117 = vmatmul.bf16.vlgmr.msra.gmra.mxu0 %v199_v8  ;;  %122 = vmatmul.bf16.vlgmr.msra.gmra.mxu1 %v200_v9 }
  0x9e   :  { %v118_v11 = vpop.f32.mrf.mxu0  ;;  %v123_v12 = vpop.f32.mrf.mxu1 }
  0x9f   :  { %v147_v13 = vadd.f32 %v218_v10, %v118_v11  ;;  %v149_v14 = vadd.f32 %v218_v10, %v123_v12 }
  0xa1   :  { %151 = vst [vmem:[%s293_s4] sm:$0xff] %v147_v13 }
  0xa2   :  { %153 = vst [vmem:[%s293_s4 + $0x10] sm:$0xff] %v149_v14 }
  0xa6   :  { %v120_v15 = vpop.f32.mrf.mxu0  ;;  %v125_v16 = vpop.f32.mrf.mxu1 }
  0xa7   :  { %v148_v17 = vadd.f32 %v218_v10, %v120_v15  ;;  %v150_v18 = vadd.f32 %v218_v10, %v125_v16 }
  0xa9   :  { %152 = vst [vmem:[%s293_s4 + $0x8] sm:$0xff] %v148_v17 }
  0xaa   :  { %154 = vst [vmem:[%s293_s4 + $0x18] sm:$0xff] %v150_v18 }

// kernel: _lambda_.6
= control target key start
LH: loop header
LB: loop body
LE: loop exit
PB: predicated region body
PF: predicated region fallthrough
CT: control target
= control target key end

     0   :  { %v207_v18 = vmov 128.0   ;;  %s402_s0 = inlined_call_operand.vmem [shape: f32[128,128], index: 0, kind: input, shape index: {}]   ;;  %s403_s1 = inlined_call_operand.vmem [shape: f32[128,128], index: 1, kind: output, shape index: {}]  }
   0x1   :  { %v8_v0 = vld [vmem:[%s402_s0] sm:$0xff]  ;;  %v9_v1 = vld [vmem:[%s402_s0 + $0x8] sm:$0xff]  ;;  %v10_v2 = vld [vmem:[%s402_s0 + $0x10] sm:$0xff]  ;;  %203 = vrcp.f32 %v207_v18 }
   0x2   :  { %v24_v3 = vadd.f32 %v9_v1, %v8_v0  ;;  %v11_v4 = vld [vmem:[%s402_s0 + $0x18] sm:$0xff]  ;;  %v12_v6 = vld [vmem:[%s402_s0 + $0x20] sm:$0xff]  ;;  %v13_v8 = vld [vmem:[%s402_s0 + $0x28] sm:$0xff] }
   0x3   :  { %v14_v10 = vld [vmem:[%s402_s0 + $0x30] sm:$0xff]  ;;  %v15_v12 = vld [vmem:[%s402_s0 + $0x38] sm:$0xff]  ;;  %v16_v14 = vld [vmem:[%s402_s0 + $0x40] sm:$0xff] }
   0x4   :  { %v25_v5 = vadd.f32 %v24_v3, %v10_v2  ;;  %v17_v16 = vld [vmem:[%s402_s0 + $0x48] sm:$0xff]  ;;  %v18_v19 = vld [vmem:[%s402_s0 + $0x50] sm:$0xff]  ;;  %v19_v21 = vld [vmem:[%s402_s0 + $0x58] sm:$0xff] }
   0x5   :  { %v20_v23 = vld [vmem:[%s402_s0 + $0x60] sm:$0xff]  ;;  %v21_v26 = vld [vmem:[%s402_s0 + $0x68] sm:$0xff]  ;;  %v22_v28 = vld [vmem:[%s402_s0 + $0x70] sm:$0xff] }
   0x6   :  { %v26_v7 = vadd.f32 %v25_v5, %v11_v4  ;;  %v23_v31 = vld [vmem:[%s402_s0 + $0x78] sm:$0xff] }
   0x7   :  { %v204_v24 = vpop.eup %203 }
   0x8   :  { %v27_v9 = vadd.f32 %v26_v7, %v12_v6  ;;  %v46_v29 = vmul.f32 128.0, %v204_v24  ;;  %vm50_vm0 = vweird.f32 %v204_v24 }
   0xa   :  { %v28_v11 = vadd.f32 %v27_v9, %v13_v8  ;;  %v47_v33 = vsub.f32 1.0, %v46_v29 }
   0xc   :  { %v29_v13 = vadd.f32 %v28_v11, %v14_v10  ;;  %v48_v36 = vmul.f32 %v204_v24, %v47_v33 }
   0xe   :  { %v30_v15 = vadd.f32 %v29_v13, %v15_v12  ;;  %v49_v39 = vadd.f32 %v204_v24, %v48_v36 }
  0x10   :  { %v31_v17 = vadd.f32 %v30_v15, %v16_v14  ;;  %v51_v42 = vsel %vm50_vm0, %v204_v24, %v49_v39 }
  0x12   :  { %v32_v20 = vadd.f32 %v31_v17, %v17_v16 }
  0x14   :  { %v33_v22 = vadd.f32 %v32_v20, %v18_v19 }
  0x16   :  { %v34_v25 = vadd.f32 %v33_v22, %v19_v21 }
  0x18   :  { %v35_v27 = vadd.f32 %v34_v25, %v20_v23 }
  0x1a   :  { %v36_v30 = vadd.f32 %v35_v27, %v21_v26 }
  0x1c   :  { %v37_v32 = vadd.f32 %v36_v30, %v22_v28 }
  0x1e   :  { %v38_v34 = vadd.f32 %v37_v32, %v23_v31 }
  0x20   :  { %v39_v35 = vrot.slane %v38_v34, 4 }
  0x22   :  { %v40_v37 = vadd.f32 %v39_v35, %v38_v34 }
  0x24   :  { %v41_v38 = vrot.slane %v40_v37, 2 }
  0x26   :  { %v42_v40 = vadd.f32 %v41_v38, %v40_v37 }
  0x28   :  { %v43_v41 = vrot.slane %v42_v40, 1 }
  0x2a   :  { %v44_v43 = vadd.f32 %v43_v41, %v42_v40 }
  0x2c   :  { %v52_v44 = vmul.f32 %v51_v42, %v44_v43 }
  0x2e   :  { %v266_v45 = vsub.f32 %v8_v0, %v52_v44  ;;  %v268_v46 = vsub.f32 %v9_v1, %v52_v44  ;;  %v270_v47 = vsub.f32 %v10_v2, %v52_v44  ;;  %v272_v48 = vsub.f32 %v11_v4, %v52_v44 }
  0x2f   :  { %v278_v51 = vsub.f32 %v12_v6, %v52_v44  ;;  %v282_v53 = vsub.f32 %v13_v8, %v52_v44  ;;  %v59_v56 = vsub.f32 %v14_v10, %v52_v44  ;;  %v60_v59 = vsub.f32 %v15_v12, %v52_v44 }
  0x30   :  { %v69_v49 = vmul.f32 %v266_v45, %v266_v45  ;;  %v70_v50 = vmul.f32 %v268_v46, %v268_v46  ;;  %v71_v52 = vmul.f32 %v270_v47, %v270_v47  ;;  %v72_v54 = vmul.f32 %v272_v48, %v272_v48 }
  0x31   :  { %v73_v57 = vmul.f32 %v278_v51, %v278_v51  ;;  %v74_v60 = vmul.f32 %v282_v53, %v282_v53  ;;  %v290_v62 = vsub.f32 %v16_v14, %v52_v44  ;;  %v75_v63 = vmul.f32 %v59_v56, %v59_v56 }
  0x32   :  { %v85_v55 = vadd.f32 %v70_v50, %v69_v49  ;;  %v292_v1 = vsub.f32 %v17_v16, %v52_v44  ;;  %v76_v2 = vmul.f32 %v60_v59, %v60_v59  ;;  %v294_v4 = vsub.f32 %v18_v19, %v52_v44 }
  0x33   :  { %v77_v5 = vmul.f32 %v290_v62, %v290_v62  ;;  %v298_v7 = vsub.f32 %v19_v21, %v52_v44  ;;  %v302_v10 = vsub.f32 %v20_v23, %v52_v44  ;;  %v306_v13 = vsub.f32 %v21_v26, %v52_v44 }
  0x34   :  { %v86_v58 = vadd.f32 %v85_v55, %v71_v52  ;;  %v78_v8 = vmul.f32 %v292_v1, %v292_v1  ;;  %v79_v11 = vmul.f32 %v294_v4, %v294_v4  ;;  %v310_v16 = vsub.f32 %v22_v28, %v52_v44 }
  0x35   :  { %v80_v14 = vmul.f32 %v298_v7, %v298_v7  ;;  %v81_v17 = vmul.f32 %v302_v10, %v302_v10  ;;  %v314_v19 = vsub.f32 %v23_v31, %v52_v44  ;;  %v82_v20 = vmul.f32 %v306_v13, %v306_v13 }
  0x36   :  { %v87_v61 = vadd.f32 %v86_v58, %v72_v54  ;;  %v83_v22 = vmul.f32 %v310_v16, %v310_v16 }
  0x37   :  { %v84_v24 = vmul.f32 %v314_v19, %v314_v19 }
  0x38   :  { %v88_v0 = vadd.f32 %v87_v61, %v73_v57 }
  0x3a   :  { %v89_v3 = vadd.f32 %v88_v0, %v74_v60 }
  0x3c   :  { %v90_v6 = vadd.f32 %v89_v3, %v75_v63 }
  0x3e   :  { %v91_v9 = vadd.f32 %v90_v6, %v76_v2 }
  0x40   :  { %v92_v12 = vadd.f32 %v91_v9, %v77_v5 }
  0x42   :  { %v93_v15 = vadd.f32 %v92_v12, %v78_v8 }
  0x44   :  { %v94_v18 = vadd.f32 %v93_v15, %v79_v11 }
  0x46   :  { %v95_v21 = vadd.f32 %v94_v18, %v80_v14 }
  0x48   :  { %v96_v23 = vadd.f32 %v95_v21, %v81_v17 }
  0x4a   :  { %v97_v25 = vadd.f32 %v96_v23, %v82_v20 }
  0x4c   :  { %v98_v26 = vadd.f32 %v97_v25, %v83_v22 }
  0x4e   :  { %v99_v27 = vadd.f32 %v98_v26, %v84_v24 }
  0x50   :  { %v100_v28 = vrot.slane %v99_v27, 4 }
  0x52   :  { %v101_v29 = vadd.f32 %v100_v28, %v99_v27 }
  0x54   :  { %v102_v30 = vrot.slane %v101_v29, 2 }
  0x56   :  { %v103_v32 = vadd.f32 %v102_v30, %v101_v29 }
  0x58   :  { %v104_v31 = vrot.slane %v103_v32, 1 }
  0x5a   :  { %v105_v33 = vadd.f32 %v104_v31, %v103_v32 }
  0x5c   :  { %v106_v34 = vmul.f32 %v105_v33, %v51_v42 }
  0x5e   :  { %v107_v35 = vadd.f32 1e-05, %v106_v34 }
  0x60   :  { %205 = vrsqrt.f32 %v107_v35  ;;  %vm114_vm1 = vweird.f32 %v107_v35 }
  0x66   :  { %v206_v36 = vpop.eup %205 }
  0x67   :  { %v109_v37 = vmul.f32 %v206_v36, %v107_v35  ;;  %vm115_vm2 = vweird.f32 %v206_v36 }
  0x68   :  { %vm116_vm3 = vmor %vm114_vm1, %vm115_vm2 }
  0x69   :  { %v110_v38 = vmul.f32 %v206_v36, %v109_v37 }
  0x6b   :  { %v111_v39 = vmul.f32 0.5, %v110_v38 }
  0x6d   :  { %v112_v40 = vsub.f32 1.5, %v111_v39 }
  0x6f   :  { %v113_v41 = vmul.f32 %v206_v36, %v112_v40 }
  0x71   :  { %v322_v43 = vsel %vm116_vm3, %v206_v36, %v113_v41 }
  0x72   :  { %v118_v44 = vmul.f32 %v322_v43, %v266_v45  ;;  %v119_v49 = vmul.f32 %v322_v43, %v268_v46  ;;  %v120_v42 = vmul.f32 %v322_v43, %v270_v47  ;;  %v121_v50 = vmul.f32 %v322_v43, %v272_v48 }
  0x73   :  { %v122_v52 = vmul.f32 %v322_v43, %v278_v51  ;;  %v123_v54 = vmul.f32 %v322_v43, %v282_v53  ;;  %v124_v55 = vmul.f32 %v322_v43, %v59_v56  ;;  %v125_v57 = vmul.f32 %v322_v43, %v60_v59 }
  0x74   :  { %vm134_vm4 = vcmp.ge.f32.partialorder %v118_v44, 0.0  ;;  %v150_v45 = vmul.f32 0.25, %v118_v44  ;;  %vm135_vm5 = vcmp.ge.f32.partialorder %v119_v49, 0.0  ;;  %v151_v46 = vmul.f32 0.25, %v119_v49 }
  0x75   :  { %vm136_vm6 = vcmp.ge.f32.partialorder %v120_v42, 0.0  ;;  %v152_v58 = vmul.f32 0.25, %v120_v42  ;;  %vm137_vm7 = vcmp.ge.f32.partialorder %v121_v50, 0.0  ;;  %v153_v47 = vmul.f32 0.25, %v121_v50 }
  0x76   :  { %v166_v60 = vsel %vm134_vm4, %v118_v44, %v150_v45  ;;  %v167_v48 = vsel %vm135_vm5, %v119_v49, %v151_v46  ;;  %vm138_vm8 = vcmp.ge.f32.partialorder %v122_v52, 0.0  ;;  %v154_v61 = vmul.f32 0.25, %v122_v52 }
  0x77   :  { %182 = vst [vmem:[%s403_s1] sm:$0xff] %v166_v60  ;;  %v168_v51 = vsel %vm136_vm6, %v120_v42, %v152_v58  ;;  %v169_v53 = vsel %vm137_vm7, %v121_v50, %v153_v47  ;;  %vm139_vm9 = vcmp.ge.f32.partialorder %v123_v54, 0.0  ;;  %v155_v56 = vmul.f32 0.25, %v123_v54 }
  0x78   :  { %183 = vst [vmem:[%s403_s1 + $0x8] sm:$0xff] %v167_v48  ;;  %v170_v59 = vsel %vm138_vm8, %v122_v52, %v154_v61  ;;  %vm140_vm10 = vcmp.ge.f32.partialorder %v124_v55, 0.0  ;;  %v156_v63 = vmul.f32 0.25, %v124_v55  ;;  %vm141_vm11 = vcmp.ge.f32.partialorder %v125_v57, 0.0 }
  0x79   :  { %184 = vst [vmem:[%s403_s1 + $0x10] sm:$0xff] %v168_v51  ;;  %v171_v0 = vsel %vm139_vm9, %v123_v54, %v155_v56  ;;  %v157_v2 = vmul.f32 0.25, %v125_v57  ;;  %v126_v3 = vmul.f32 %v322_v43, %v290_v62  ;;  %v127_v5 = vmul.f32 %v322_v43, %v292_v1 }
  0x7a   :  { %185 = vst [vmem:[%s403_s1 + $0x18] sm:$0xff] %v169_v53  ;;  %v172_v6 = vsel %vm140_vm10, %v124_v55, %v156_v63  ;;  %v128_v8 = vmul.f32 %v322_v43, %v294_v4  ;;  %v129_v9 = vmul.f32 %v322_v43, %v298_v7  ;;  %v130_v11 = vmul.f32 %v322_v43, %v302_v10 }
  0x7b   :  { %186 = vst [vmem:[%s403_s1 + $0x20] sm:$0xff] %v170_v59  ;;  %v173_v62 = vsel %vm141_vm11, %v125_v57, %v157_v2  ;;  %vm142_vm12 = vcmp.ge.f32.partialorder %v126_v3, 0.0  ;;  %v158_v1 = vmul.f32 0.25, %v126_v3  ;;  %vm143_vm13 = vcmp.ge.f32.partialorder %v127_v5, 0.0 }
  0x7c   :  { %187 = vst [vmem:[%s403_s1 + $0x28] sm:$0xff] %v171_v0  ;;  %v159_v12 = vmul.f32 0.25, %v127_v5  ;;  %vm144_vm14 = vcmp.ge.f32.partialorder %v128_v8, 0.0  ;;  %v160_v4 = vmul.f32 0.25, %v128_v8  ;;  %vm145_vm15 = vcmp.ge.f32.partialorder %v129_v9, 0.0 }
  0x7d   :  { %188 = vst [vmem:[%s403_s1 + $0x30] sm:$0xff] %v172_v6  ;;  %v174_v7 = vsel %vm142_vm12, %v126_v3, %v158_v1  ;;  %v161_v10 = vmul.f32 0.25, %v129_v9  ;;  %vm146_vm0 = vcmp.ge.f32.partialorder %v130_v11, 0.0  ;;  %v162_v14 = vmul.f32 0.25, %v130_v11 }
  0x7e   :  { %189 = vst [vmem:[%s403_s1 + $0x38] sm:$0xff] %v173_v62  ;;  %v175_v15 = vsel %vm143_vm13, %v127_v5, %v159_v12  ;;  %v176_v17 = vsel %vm144_vm14, %v128_v8, %v160_v4  ;;  %v131_v18 = vmul.f32 %v322_v43, %v306_v13  ;;  %v132_v20 = vmul.f32 %v322_v43, %v310_v16 }
  0x7f   :  { %190 = vst [vmem:[%s403_s1 + $0x40] sm:$0xff] %v174_v7  ;;  %v177_v21 = vsel %vm145_vm15, %v129_v9, %v161_v10  ;;  %v178_v22 = vsel %vm146_vm0, %v130_v11, %v162_v14  ;;  %v133_v23 = vmul.f32 %v322_v43, %v314_v19 }
  0x80   :  { %191 = vst [vmem:[%s403_s1 + $0x48] sm:$0xff] %v175_v15  ;;  %vm147_vm1 = vcmp.ge.f32.partialorder %v131_v18, 0.0  ;;  %v163_v24 = vmul.f32 0.25, %v131_v18  ;;  %vm148_vm2 = vcmp.ge.f32.partialorder %v132_v20, 0.0  ;;  %v164_v13 = vmul.f32 0.25, %v132_v20 }
  0x81   :  { %192 = vst [vmem:[%s403_s1 + $0x50] sm:$0xff] %v176_v17  ;;  %vm149_vm3 = vcmp.ge.f32.partialorder %v133_v23, 0.0  ;;  %v165_v16 = vmul.f32 0.25, %v133_v23 }
  0x82   :  { %193 = vst [vmem:[%s403_s1 + $0x58] sm:$0xff] %v177_v21  ;;  %v179_v25 = vsel %vm147_vm1, %v131_v18, %v163_v24  ;;  %v180_v19 = vsel %vm148_vm2, %v132_v20, %v164_v13 }
  0x83   :  { %194 = vst [vmem:[%s403_s1 + $0x60] sm:$0xff] %v178_v22  ;;  %v181_v26 = vsel %vm149_vm3, %v133_v23, %v165_v16 }
  0x84   :  { %195 = vst [vmem:[%s403_s1 + $0x68] sm:$0xff] %v179_v25 }
  0x85   :  { %196 = vst [vmem:[%s403_s1 + $0x70] sm:$0xff] %v180_v19 }
  0x86   :  { %197 = vst [vmem:[%s403_s1 + $0x78] sm:$0xff] %v181_v26 }

// kernel: _lambda_.7
= control target key start
LH: loop header
LB: loop body
LE: loop exit
PB: predicated region body
PF: predicated region fallthrough
CT: control target
= control target key end

     0   :  { %s1394_s1 = inlined_call_operand.vmem [shape: bf16[1024,128], index: 1, kind: input, shape index: {}]   ;;  %s1395_s0 = inlined_call_operand.vmem [shape: bf16[16,1024], index: 0, kind: input, shape index: {}]   ;;  %s1396_s2 = inlined_call_operand.vmem [shape: f32[1,128], index: 2, kind: input, shape index: {}]   ;;  %s1397_s3 = inlined_call_operand.vmem [shape: f32[1,128], index: 3, kind: input, shape index: {}]   ;;  %s1398_s4 = inlined_call_operand.vmem [shape: f32[16,128], index: 4, kind: output, shape index: {}]  }
   0x1   :  { %v1048_v0 = vld [vmem:[%s1394_s1 + $0x38] sm:$0xff]  ;;  %v1047_v4 = vld [vmem:[%s1394_s1 + $0x30] sm:$0xff]  ;;  %v1046_v8 = vld [vmem:[%s1394_s1 + $0x28] sm:$0xff] }
   0x2   :  { %v1056_v1 = vld [vmem:[%s1394_s1 + $0x78] sm:$0xff]  ;;  %585 = vmatpush.bf16.msra.mxu0 %v1048_v0  ;;  %v1055_v5 = vld [vmem:[%s1394_s1 + $0x70] sm:$0xff]  ;;  %v1054_v9 = vld [vmem:[%s1394_s1 + $0x68] sm:$0xff] }
   0x3   :  { %v1064_v2 = vld [vmem:[%s1394_s1 + $0xb8] sm:$0xff]  ;;  %599 = vmatpush.bf16.msra.mxu1 %v1056_v1  ;;  %v1063_v6 = vld [vmem:[%s1394_s1 + $0xb0] sm:$0xff]  ;;  %v1062_v10 = vld [vmem:[%s1394_s1 + $0xa8] sm:$0xff] }
   0x4   :  { %v1072_v3 = vld [vmem:[%s1394_s1 + $0xf8] sm:$0xff]  ;;  %613 = vmatpush.bf16.msra.mxu2 %v1064_v2  ;;  %v1071_v7 = vld [vmem:[%s1394_s1 + $0xf0] sm:$0xff]  ;;  %v1070_v11 = vld [vmem:[%s1394_s1 + $0xe8] sm:$0xff] }
   0x5   :  { %627 = vmatpush.bf16.msra.mxu3 %v1072_v3  ;;  %v1045_v12 = vld [vmem:[%s1394_s1 + $0x20] sm:$0xff]  ;;  %v1044_v16 = vld [vmem:[%s1394_s1 + $0x18] sm:$0xff]  ;;  %v1043_v20 = vld [vmem:[%s1394_s1 + $0x10] sm:$0xff] }
   0x6   :  { %586 = vmatpush.bf16.msra.mxu0 %v1047_v4  ;;  %v1053_v13 = vld [vmem:[%s1394_s1 + $0x60] sm:$0xff]  ;;  %v1052_v17 = vld [vmem:[%s1394_s1 + $0x58] sm:$0xff]  ;;  %v1051_v21 = vld [vmem:[%s1394_s1 + $0x50] sm:$0xff] }
   0x7   :  { %600 = vmatpush.bf16.msra.mxu1 %v1055_v5  ;;  %v1061_v14 = vld [vmem:[%s1394_s1 + $0xa0] sm:$0xff]  ;;  %v1060_v18 = vld [vmem:[%s1394_s1 + $0x98] sm:$0xff]  ;;  %v1059_v22 = vld [vmem:[%s1394_s1 + $0x90] sm:$0xff] }
   0x8   :  { %614 = vmatpush.bf16.msra.mxu2 %v1063_v6  ;;  %v1069_v15 = vld [vmem:[%s1394_s1 + $0xe0] sm:$0xff]  ;;  %v1068_v19 = vld [vmem:[%s1394_s1 + $0xd8] sm:$0xff]  ;;  %v1067_v23 = vld [vmem:[%s1394_s1 + $0xd0] sm:$0xff] }
   0x9   :  { %628 = vmatpush.bf16.msra.mxu3 %v1071_v7  ;;  %v1042_v24 = vld [vmem:[%s1394_s1 + $0x8] sm:$0xff]  ;;  %v1041_v28 = vld [vmem:[%s1394_s1] sm:$0xff]  ;;  %v1080_v32 = vld [vmem:[%s1394_s1 + $0x138] sm:$0xff] }
   0xa   :  { %587 = vmatpush.bf16.msra.mxu0 %v1046_v8  ;;  %v1050_v25 = vld [vmem:[%s1394_s1 + $0x48] sm:$0xff]  ;;  %v1049_v29 = vld [vmem:[%s1394_s1 + $0x40] sm:$0xff]  ;;  %v1088_v33 = vld [vmem:[%s1394_s1 + $0x178] sm:$0xff] }
   0xb   :  { %601 = vmatpush.bf16.msra.mxu1 %v1054_v9  ;;  %v1058_v26 = vld [vmem:[%s1394_s1 + $0x88] sm:$0xff]  ;;  %v1057_v30 = vld [vmem:[%s1394_s1 + $0x80] sm:$0xff]  ;;  %v1096_v42 = vld [vmem:[%s1394_s1 + $0x1b8] sm:$0xff] }
   0xc   :  { %615 = vmatpush.bf16.msra.mxu2 %v1062_v10  ;;  %v1066_v27 = vld [vmem:[%s1394_s1 + $0xc8] sm:$0xff]  ;;  %v1065_v31 = vld [vmem:[%s1394_s1 + $0xc0] sm:$0xff]  ;;  %v1104_v43 = vld [vmem:[%s1394_s1 + $0x1f8] sm:$0xff] }
   0xd   :  { %629 = vmatpush.bf16.msra.mxu3 %v1070_v11  ;;  %v755_v34 = vld [vmem:[%s1395_s0 + $0x8] sm:$0xf]  ;;  %v1034_v36 = vld [vmem:[%s1395_s0 + $0xc] sm:$0xf]  ;;  %v747_v38 = vld [vmem:[%s1395_s0] sm:$0xf] }
   0xe   :  { %588 = vmatpush.bf16.msra.mxu0 %v1045_v12  ;;  %v1038_v35 = vld [vmem:[%s1395_s0 + $0x24] sm:$0xf0]  ;;  %v757_v37 = vld [vmem:[%s1395_s0 + $0x28] sm:$0xf0]  ;;  %v1037_v39 = vld [vmem:[%s1395_s0 + $0x1c] sm:$0xf0] }
   0xf   :  { %602 = vmatpush.bf16.msra.mxu1 %v1053_v13  ;;  %v1033_v40 = vld [vmem:[%s1395_s0 + $0x4] sm:$0xf]  ;;  %v756_v44 = vor.u32 %v1038_v35, %v755_v34  ;;  %v760_v45 = vor.u32 %v1034_v36, %v757_v37  ;;  %v748_v46 = vor.u32 %v1037_v39, %v747_v38  ;;  %v1079_v48 = vld [vmem:[%s1394_s1 + $0x130] sm:$0xff]  ;;  %v1078_v52 = vld [vmem:[%s1394_s1 + $0x128] sm:$0xff] }
  0x10   :  { %616 = vmatpush.bf16.msra.mxu2 %v1061_v14  ;;  %v749_v41 = vld [vmem:[%s1395_s0 + $0x20] sm:$0xf0]  ;;  %v1087_v49 = vld [vmem:[%s1394_s1 + $0x170] sm:$0xff]  ;;  %v1086_v53 = vld [vmem:[%s1394_s1 + $0x168] sm:$0xff] }
  0x11   :  { %630 = vmatpush.bf16.msra.mxu3 %v1069_v15  ;;  %v752_v47 = vor.u32 %v1033_v40, %v749_v41  ;;  %v1095_v50 = vld [vmem:[%s1394_s1 + $0x1b0] sm:$0xff]  ;;  %v1094_v54 = vld [vmem:[%s1394_s1 + $0x1a8] sm:$0xff]  ;;  %v1077_v56 = vld [vmem:[%s1394_s1 + $0x120] sm:$0xff] }
  0x12   :  { %589 = vmatpush.bf16.msra.mxu0 %v1044_v16  ;;  %v1103_v51 = vld [vmem:[%s1394_s1 + $0x1f0] sm:$0xff]  ;;  %v1102_v55 = vld [vmem:[%s1394_s1 + $0x1e8] sm:$0xff]  ;;  %v1085_v57 = vld [vmem:[%s1394_s1 + $0x160] sm:$0xff] }
  0x13   :  { %603 = vmatpush.bf16.msra.mxu1 %v1052_v17  ;;  %v1093_v58 = vld [vmem:[%s1394_s1 + $0x1a0] sm:$0xff]  ;;  %v1076_v60 = vld [vmem:[%s1394_s1 + $0x118] sm:$0xff]  ;;  %v1075_v0 = vld [vmem:[%s1394_s1 + $0x110] sm:$0xff] }
  0x14   :  { %617 = vmatpush.bf16.msra.mxu2 %v1060_v18  ;;  %v1101_v59 = vld [vmem:[%s1394_s1 + $0x1e0] sm:$0xff]  ;;  %v1084_v61 = vld [vmem:[%s1394_s1 + $0x158] sm:$0xff]  ;;  %v1083_v1 = vld [vmem:[%s1394_s1 + $0x150] sm:$0xff] }
  0x15   :  { %631 = vmatpush.bf16.msra.mxu3 %v1068_v19  ;;  %v1092_v62 = vld [vmem:[%s1394_s1 + $0x198] sm:$0xff]  ;;  %v1091_v2 = vld [vmem:[%s1394_s1 + $0x190] sm:$0xff]  ;;  %v1074_v4 = vld [vmem:[%s1394_s1 + $0x108] sm:$0xff] }
  0x16   :  { %590 = vmatpush.bf16.msra.mxu0 %v1043_v20  ;;  %v1100_v63 = vld [vmem:[%s1394_s1 + $0x1d8] sm:$0xff]  ;;  %v1099_v3 = vld [vmem:[%s1394_s1 + $0x1d0] sm:$0xff]  ;;  %v1082_v5 = vld [vmem:[%s1394_s1 + $0x148] sm:$0xff] }
  0x17   :  { %604 = vmatpush.bf16.msra.mxu1 %v1051_v21  ;;  %v1090_v6 = vld [vmem:[%s1394_s1 + $0x188] sm:$0xff]  ;;  %v1073_v8 = vld [vmem:[%s1394_s1 + $0x100] sm:$0xff]  ;;  %v763_v12 = vld [vmem:[%s1395_s0 + $0x10] sm:$0xf] }
  0x18   :  { %618 = vmatpush.bf16.msra.mxu2 %v1059_v22  ;;  %v1098_v7 = vld [vmem:[%s1394_s1 + $0x1c8] sm:$0xff]  ;;  %v1081_v9 = vld [vmem:[%s1394_s1 + $0x140] sm:$0xff]  ;;  %v1039_v13 = vld [vmem:[%s1395_s0 + $0x2c] sm:$0xf0] }
  0x19   :  { %632 = vmatpush.bf16.msra.mxu3 %v1067_v23  ;;  %v1089_v10 = vld [vmem:[%s1394_s1 + $0x180] sm:$0xff]  ;;  %v1035_v14 = vld [vmem:[%s1395_s0 + $0x14] sm:$0xf]  ;;  %v771_v16 = vld [vmem:[%s1395_s0 + $0x18] sm:$0xf]  ;;  %v764_v20 = vor.u32 %v1039_v13, %v763_v12 }
  0x1a   :  { %591 = vmatpush.bf16.msra.mxu0 %v1042_v24  ;;  %v1097_v11 = vld [vmem:[%s1394_s1 + $0x1c0] sm:$0xff]  ;;  %v765_v15 = vld [vmem:[%s1395_s0 + $0x30] sm:$0xf0]  ;;  %v1040_v17 = vld [vmem:[%s1395_s0 + $0x34] sm:$0xf0] }
  0x1b   :  { %605 = vmatpush.bf16.msra.mxu1 %v1050_v25  ;;  %v1036_v18 = vld [vmem:[%s1395_s0 + $0x1c] sm:$0xf]  ;;  %v768_v21 = vor.u32 %v1035_v14, %v765_v15  ;;  %v772_v22 = vor.u32 %v1040_v17, %v771_v16 }
  0x1c   :  { %619 = vmatpush.bf16.msra.mxu2 %v1058_v26  ;;  %v773_v19 = vld [vmem:[%s1395_s0 + $0x38] sm:$0xf0] }
  0x1d   :  { %633 = vmatpush.bf16.msra.mxu3 %v1066_v27  ;;  %v776_v23 = vor.u32 %v1036_v18, %v773_v19 }
  0x1e   :  { %592 = vmatpush.bf16.msra.mxu0 %v1041_v28 }
  0x1f   :  { %606 = vmatpush.bf16.msra.mxu1 %v1049_v29 }
  0x20   :  { %620 = vmatpush.bf16.msra.mxu2 %v1057_v30 }
  0x21   :  { %634 = vmatpush.bf16.msra.mxu3 %v1065_v31  ;;  %593 = vmatmul.bf16.vlgmr.msra.gmra.mxu0 %v748_v46 }
  0x22   :  { %641 = vmatpush.bf16.msrb.mxu0 %v1080_v32  ;;  %607 = vmatmul.bf16.vlgmr.msra.gmra.mxu1 %v752_v47  ;;  %v1107_v47 = vld [vmem:[%s1396_s2] ss:$0 sm:$0xff] }
  0x23   :  { %655 = vmatpush.bf16.msrb.mxu1 %v1088_v33  ;;  %621 = vmatmul.bf16.vlgmr.msra.gmra.mxu2 %v756_v44 }
  0x24   :  { %669 = vmatpush.bf16.msrb.mxu2 %v1096_v42  ;;  %635 = vmatmul.bf16.vlgmr.msra.gmra.mxu3 %v760_v45 }
  0x25   :  { %683 = vmatpush.bf16.msrb.mxu3 %v1104_v43 }
  0x26   :  { %642 = vmatpush.bf16.msrb.mxu0 %v1079_v48 }
  0x27   :  { %656 = vmatpush.bf16.msrb.mxu1 %v1087_v49 }
  0x28   :  { %670 = vmatpush.bf16.msrb.mxu2 %v1095_v50 }
  0x29   :  { %684 = vmatpush.bf16.msrb.mxu3 %v1103_v51 }
  0x2a   :  { %643 = vmatpush.bf16.msrb.mxu0 %v1078_v52 }
  0x2b   :  { %657 = vmatpush.bf16.msrb.mxu1 %v1086_v53 }
  0x2c   :  { %671 = vmatpush.bf16.msrb.mxu2 %v1094_v54 }
  0x2d   :  { %685 = vmatpush.bf16.msrb.mxu3 %v1102_v55 }
  0x2e   :  { %644 = vmatpush.bf16.msrb.mxu0 %v1077_v56 }
  0x2f   :  { %658 = vmatpush.bf16.msrb.mxu1 %v1085_v57 }
  0x30   :  { %672 = vmatpush.bf16.msrb.mxu2 %v1093_v58 }
  0x31   :  { %686 = vmatpush.bf16.msrb.mxu3 %v1101_v59 }
  0x32   :  { %645 = vmatpush.bf16.msrb.mxu0 %v1076_v60 }
  0x33   :  { %659 = vmatpush.bf16.msrb.mxu1 %v1084_v61 }
  0x34   :  { %673 = vmatpush.bf16.msrb.mxu2 %v1092_v62 }
  0x35   :  { %687 = vmatpush.bf16.msrb.mxu3 %v1100_v63  ;;  %v712_v63 = vld [vmem:[%s1397_s3] sm:$0x1] }
  0x36   :  { %646 = vmatpush.bf16.msrb.mxu0 %v1075_v0  ;;  %vm713_vm0 = vcmp.gt.f32.partialorder %v712_v63, 0.0 }
  0x37   :  { %660 = vmatpush.bf16.msrb.mxu1 %v1083_v1 }
  0x38   :  { %674 = vmatpush.bf16.msrb.mxu2 %v1091_v2  ;;  %v1116_v2 = vmov 0  }
  0x39   :  { %688 = vmatpush.bf16.msrb.mxu3 %v1099_v3  ;;  %v734_v3 = vsel %vm713_vm0, 1, %v1116_v2 }
  0x3a   :  { %647 = vmatpush.bf16.msrb.mxu0 %v1074_v4 }
  0x3b   :  { %661 = vmatpush.bf16.msrb.mxu1 %v1082_v5 }
  0x3c   :  { %675 = vmatpush.bf16.msrb.mxu2 %v1090_v6  ;;  %v735_v6 = vperm.slane %v734_v3, 0 }
  0x3d   :  { %689 = vmatpush.bf16.msrb.mxu3 %v1098_v7 }
  0x3e   :  { %648 = vmatpush.bf16.msrb.mxu0 %v1073_v8  ;;  %vm736_vm1 = vcmp.eq.s32.totalorder %v735_v6, 1 }
  0x3f   :  { %662 = vmatpush.bf16.msrb.mxu1 %v1081_v9 }
  0x40   :  { %676 = vmatpush.bf16.msrb.mxu2 %v1089_v10 }
  0x41   :  { %690 = vmatpush.bf16.msrb.mxu3 %v1097_v11  ;;  %649 = vmatmul.bf16.vlgmr.msrb.gmra.mxu0 %v764_v20 }
  0x42   :  { %663 = vmatmul.bf16.vlgmr.msrb.gmra.mxu1 %v768_v21 }
  0x43   :  { %677 = vmatmul.bf16.vlgmr.msrb.gmra.mxu2 %v772_v22 }
  0x44   :  { %691 = vmatmul.bf16.vlgmr.msrb.gmra.mxu3 %v776_v23 }
  0x9e   :  { %v594_v24 = vpop.f32.mrf.mxu0 }
  0x9f   :  { %v608_v25 = vpop.f32.mrf.mxu1 }
  0xa0   :  { %v609_v28 = vadd.f32 %v608_v25, %v594_v24 }
  0xa6   :  { %v622_v26 = vpop.f32.mrf.mxu2  ;;  %v596_v29 = vpop.f32.mrf.mxu0 }
  0xa7   :  { %v636_v27 = vpop.f32.mrf.mxu3  ;;  %v610_v30 = vpop.f32.mrf.mxu1  ;;  %v623_v31 = vadd.f32 %v622_v26, %v609_v28 }
  0xa8   :  { %v611_v35 = vadd.f32 %v610_v30, %v596_v29 }
  0xa9   :  { %v637_v34 = vadd.f32 %v636_v27, %v623_v31 }
  0xae   :  { %v624_v32 = vpop.f32.mrf.mxu2 }
  0xaf   :  { %v638_v33 = vpop.f32.mrf.mxu3  ;;  %v625_v39 = vadd.f32 %v624_v32, %v611_v35 }
  0xb1   :  { %v639_v43 = vadd.f32 %v638_v33, %v625_v39 }
  0xbe   :  { %v650_v36 = vpop.f32.mrf.mxu0 }
  0xbf   :  { %v651_v37 = vadd.f32 %v650_v36, %v637_v34  ;;  %v664_v38 = vpop.f32.mrf.mxu1 }
  0xc1   :  { %v665_v40 = vadd.f32 %v664_v38, %v651_v37 }
  0xc6   :  { %v678_v41 = vpop.f32.mrf.mxu2  ;;  %v652_v45 = vpop.f32.mrf.mxu0 }
  0xc7   :  { %v692_v42 = vpop.f32.mrf.mxu3  ;;  %v679_v44 = vadd.f32 %v678_v41, %v665_v40  ;;  %v653_v48 = vadd.f32 %v652_v45, %v639_v43  ;;  %v666_v49 = vpop.f32.mrf.mxu1 }
  0xc9   :  { %v693_v46 = vadd.f32 %v692_v42, %v679_v44  ;;  %v667_v51 = vadd.f32 %v666_v49, %v653_v48 }
  0xcb   :  { %v710_v50 = vadd.f32 %v1107_v47, %v693_v46 }
  0xcd   :  { %v714_v53 = vand.u32 2147483647, %v710_v50  ;;  %v728_v9 = vmax.f32 %v710_v50, 0.0 }
  0xce   :  { %v680_v52 = vpop.f32.mrf.mxu2 }
  0xcf   :  { %v681_v54 = vadd.f32 %v680_v52, %v667_v51  ;;  %v694_v55 = vpop.f32.mrf.mxu3  ;;  %v716_v56 = vsub.f32 0.0, %v714_v53 }
  0xd1   :  { %v695_v57 = vadd.f32 %v694_v55, %v681_v54  ;;  %v718_v58 = vmul.f32 1.442695, %v716_v56 }
  0xd3   :  { %1108 = vpow2.f32 %v718_v58  ;;  %v711_v59 = vadd.f32 %v1107_v47, %v695_v57 }
  0xd5   :  { %v715_v60 = vand.u32 2147483647, %v711_v59  ;;  %v729_v15 = vmax.f32 %v711_v59, 0.0 }
  0xd7   :  { %v717_v61 = vsub.f32 0.0, %v715_v60 }
  0xd9   :  { %v1109_v62 = vpop.eup %1108  ;;  %v720_v0 = vmul.f32 1.442695, %v717_v61 }
  0xda   :  { %v722_v1 = vadd.f32 1.0, %v1109_v62 }
  0xdb   :  { %1110 = vpow2.f32 %v720_v0 }
  0xdc   :  { %1112 = vlog2.f32 %v722_v1 }
  0xe1   :  { %v1111_v4 = vpop.eup %1110 }
  0xe2   :  { %v1113_v5 = vpop.eup %1112  ;;  %v723_v7 = vadd.f32 1.0, %v1111_v4 }
  0xe3   :  { %v725_v8 = vmul.f32 0.6931472, %v1113_v5 }
  0xe4   :  { %1114 = vlog2.f32 %v723_v7 }
  0xe5   :  { %v730_v10 = vadd.f32 %v728_v9, %v725_v8 }
  0xe7   :  { %v732_v11 = vadd.f32 1e-08, %v730_v10 }
  0xe9   :  { %v737_v12 = vsel %vm736_vm1, %v732_v11, %v710_v50 }
  0xea   :  { %v1115_v13 = vpop.eup %1114  ;;  %739 = vst [vmem:[%s1398_s4] sm:$0xff] %v737_v12 }
  0xeb   :  { %v727_v14 = vmul.f32 0.6931472, %v1115_v13 }
  0xed   :  { %v731_v16 = vadd.f32 %v729_v15, %v727_v14 }
  0xef   :  { %v733_v17 = vadd.f32 1e-08, %v731_v16 }
  0xf1   :  { %v738_v18 = vsel %vm736_vm1, %v733_v17, %v711_v59 }
  0xf2   :  { %740 = vst [vmem:[%s1398_s4 + $0x8] sm:$0xff] %v738_v18 }

</bundles_post_ra>
